<compile_context>
chip_gen: v6e
topology: v6e:2x2x1
jax: 0.10.0
libtpu: 0.0.40
codegen_flags: <defaults>
</compile_context>

<pallas_src>
import functools

import jax
import jax.numpy as jnp
from jax.experimental import pallas as pl
from jax.experimental.pallas import tpu as pltpu

LANE = 128


def _round_up(v, m):
    return (v + m - 1) // m * m


def _pad2d(a, rows, cols):
    return jnp.pad(a, ((0, rows - a.shape[0]), (0, cols - a.shape[1])))


# ---------------------------------------------------------------------------
# Fused Pallas kernel: edge MLP -> scatter-add -> node MLP
# ---------------------------------------------------------------------------

def _meta_fused_kernel(idx_ref, ea_ref,                         # streamed per edge tile
                       xsp_ref, xdp_ref, ew1e_ref, eb1_ref,     # VMEM-resident
                       ew2_ref, eb2_ref,
                       npre_ref, nw1a_ref, nw2_ref, nb2_ref,
                       eout_ref, xout_ref,                      # outputs
                       agg_ref):                                # scratch accumulator
    i = pl.program_id(0)

    @pl.when(i == 0)
    def _init():
        agg_ref[...] = jnp.zeros_like(agg_ref)

    te = ea_ref.shape[0]
    n_pad = xsp_ref.shape[0]

    # ---- one-hot selectors for this edge tile (exact in bf16) ----
    idx = idx_ref[...]                                   # [TE, 2] int32
    src_col = idx[:, 0:1]
    dst_col = idx[:, 1:2]
    node_ids = jax.lax.broadcasted_iota(jnp.int32, (te, n_pad), 1)
    g_src = (node_ids == src_col).astype(jnp.float32).astype(jnp.bfloat16)
    g_dst = (node_ids == dst_col).astype(jnp.float32).astype(jnp.bfloat16)

    # ---- edge MLP: gather directly in hidden space (pre-projected weights) ----
    h = (jnp.dot(g_src, xsp_ref[...], preferred_element_type=jnp.float32)
         + jnp.dot(g_dst, xdp_ref[...], preferred_element_type=jnp.float32)
         + jnp.dot(ea_ref[...], ew1e_ref[...], preferred_element_type=jnp.float32)
         + eb1_ref[...])
    h = jnp.maximum(h, 0.0).astype(jnp.bfloat16)
    e_out = (jnp.dot(h, ew2_ref[...], preferred_element_type=jnp.float32)
             + eb2_ref[...])
    eout_ref[...] = e_out

    # ---- scatter-add onto dest nodes: reuse g_dst, contract the TE axis ----
    agg_ref[...] += jax.lax.dot_general(
        g_dst, e_out.astype(jnp.bfloat16),
        dimension_numbers=(((0,), (0,)), ((), ())),
        preferred_element_type=jnp.float32)

    # ---- node MLP at the final edge tile (loop-invariant part precomputed) ----
    @pl.when(i == pl.num_programs(0) - 1)
    def _finalize():
        hn = (jnp.dot(agg_ref[...].astype(jnp.bfloat16), nw1a_ref[...],
                      preferred_element_type=jnp.float32)
              + npre_ref[...])
        hn = jnp.maximum(hn, 0.0).astype(jnp.bfloat16)
        xout_ref[...] = (jnp.dot(hn, nw2_ref[...],
                                 preferred_element_type=jnp.float32)
                         + nb2_ref[...])


# ---------------------------------------------------------------------------
# MetaLayer forward (mirrors the PyTorch module)
# ---------------------------------------------------------------------------

@functools.partial(jax.jit, static_argnames=("edge_tile",))
def meta_layer_forward(x, edge_index, edge_attr, f, params, *, edge_tile=256):
    hi = jax.lax.Precision.HIGHEST
    n, dn = x.shape
    e, de = edge_attr.shape
    h = params["edge_w1"].shape[1]
    de_out = params["edge_w2"].shape[1]
    dn_out = params["node_w2"].shape[1]

    # Padded sizes: node rows padded to a lane multiple (dense one-hot
    # contraction), edge rows padded to the edge-tile size, all feature /
    # hidden / output dims padded to 128 so stores are lane-dense & unmasked.
    n_pad = _round_up(n, LANE)
    e_pad = _round_up(e, edge_tile)
    dep = _round_up(de, LANE)
    hp = _round_up(h, LANE)
    deop = _round_up(de_out, LANE)
    dnop = _round_up(dn_out, LANE)

    xf = x.astype(jnp.float32)
    ff = f.astype(jnp.float32)
    ew1, nw1 = params["edge_w1"], params["node_w1"]

    # ---- one-time pre-projections (f32 HIGHEST, then cast for the kernel) ----
    xs_proj = _pad2d(jnp.dot(xf, ew1[:dn], precision=hi),
                     n_pad, hp).astype(jnp.bfloat16)
    xd_proj = _pad2d(jnp.dot(xf, ew1[dn:2 * dn], precision=hi),
                     n_pad, hp).astype(jnp.bfloat16)
    node_pre = _pad2d(jnp.dot(xf, nw1[:dn], precision=hi)
                      + jnp.dot(ff, nw1[dn + de_out:], precision=hi)
                      + params["node_b1"], n_pad, hp).astype(jnp.float32)

    # ---- remaining weights (padded; in a real model this is done at init) ----
    ew1e = _pad2d(ew1[2 * dn:], dep, hp).astype(jnp.bfloat16)
    eb1 = _pad2d(params["edge_b1"], 1, hp).astype(jnp.float32)
    ew2 = _pad2d(params["edge_w2"], hp, deop).astype(jnp.bfloat16)
    eb2 = _pad2d(params["edge_b2"], 1, deop).astype(jnp.float32)
    nw1a = _pad2d(nw1[dn:dn + de_out], deop, hp).astype(jnp.bfloat16)
    nw2 = _pad2d(params["node_w2"], hp, dnop).astype(jnp.bfloat16)
    nb2 = _pad2d(params["node_b2"], 1, dnop).astype(jnp.float32)

    # ---- edge streams: attributes + merged (src, dst) index columns ----
    ea_p = _pad2d(edge_attr.astype(jnp.float32), e_pad, dep).astype(jnp.bfloat16)
    src = edge_index[0].astype(jnp.int32)
    dst = edge_index[1].astype(jnp.int32)
    pad_ids = jnp.full((e_pad - e,), n_pad, dtype=jnp.int32)  # -> all-zero one-hot
    idx = jnp.stack([jnp.concatenate([src, pad_ids]),
                     jnp.concatenate([dst, pad_ids])], axis=1)  # [e_pad, 2]

    te = edge_tile
    grid = (e_pad // te,)

    def edge_tiled(shape):                        # streams with the edge grid
        return pl.BlockSpec(shape, lambda i: (i, 0))

    def resident(shape):                          # constant index -> stays in VMEM
        return pl.BlockSpec(shape, lambda i: (0, 0))

    out_e, out_x = pl.pallas_call(
        _meta_fused_kernel,
        out_shape=(jax.ShapeDtypeStruct((e_pad, deop), jnp.float32),
                   jax.ShapeDtypeStruct((n_pad, dnop), jnp.float32)),
        grid_spec=pltpu.PrefetchScalarGridSpec(
            num_scalar_prefetch=0,
            grid=grid,
            in_specs=[
                edge_tiled((te, 2)),               # merged src/dst indices
                edge_tiled((te, dep)),             # edge_attr tile
                resident((n_pad, hp)),             # xs_proj
                resident((n_pad, hp)),             # xd_proj
                resident((dep, hp)),               # ew1e
                resident((1, hp)),                 # eb1
                resident((hp, deop)),              # ew2
                resident((1, deop)),               # eb2
                resident((n_pad, hp)),             # node_pre
                resident((deop, hp)),              # nw1a
                resident((hp, dnop)),              # nw2
                resident((1, dnop)),               # nb2
            ],
            out_specs=[
                edge_tiled((te, deop)),            # new edge_attr tiles
                resident((n_pad, dnop)),           # new x (written at finalize)
            ],
            scratch_shapes=[pltpu.VMEM((n_pad, deop), jnp.float32)],
        ),
        compiler_params=pltpu.CompilerParams(
            # single edge-tile axis carries the aggregation accumulator
            dimension_semantics=("arbitrary",),
            vmem_limit_bytes=64 * 1024 * 1024),
    )(idx, ea_p, xs_proj, xd_proj, ew1e, eb1, ew2, eb2,
      node_pre, nw1a, nw2, nb2)

    new_x = out_x[:n, :dn_out]
    new_edge_attr = out_e[:e, :de_out]
    return new_x, new_edge_attr


# ---------------------------------------------------------------------------
# Pure-JAX reference for correctness checking (f32, HIGHEST precision)
# ---------------------------------------------------------------------------

def meta_layer_reference(x, edge_index, edge_attr, f, p):
    hi = jax.lax.Precision.HIGHEST
    src, dest = edge_index[0], edge_index[1]
    ef = jnp.concatenate([x[src], x[dest], edge_attr], axis=-1)
    h = jnp.maximum(jnp.dot(ef, p["edge_w1"], precision=hi) + p["edge_b1"], 0.0)
    ea = jnp.dot(h, p["edge_w2"], precision=hi) + p["edge_b2"]
    agg = jax.ops.segment_sum(ea, dest, num_segments=x.shape[0])
    nf = jnp.concatenate([x, agg, f], axis=-1)
    h = jnp.maximum(jnp.dot(nf, p["node_w1"], precision=hi) + p["node_b1"], 0.0)
    xn = jnp.dot(h, p["node_w2"], precision=hi) + p["node_b2"]
    return xn, ea


# ---------------------------------------------------------------------------
# Main
# ---------------------------------------------------------------------------

if __name__ == "__main__":
    # Small, MetaLayer-consistent sizes, chosen so the edge grid has >1 tile
    # (exercises the accumulate / init / finalize paths) and node/edge-row
    # padding paths are both hit.
    N, E = 100, 600         # nodes, edges -> padded to 128 nodes, 768 edges
    DN, DE, DF = 8, 8, 4    # node-feat, edge-feat, nodal-forcing dims
    H = 32                  # MLP hidden
    DE_OUT, DN_OUT = DE, DN

    key = jax.random.PRNGKey(0)
    keys = jax.random.split(key, 12)

    x = jax.random.normal(keys[0], (N, DN), dtype=jnp.float32)
    edge_attr = jax.random.normal(keys[1], (E, DE), dtype=jnp.float32)
    f = jax.random.normal(keys[2], (N, DF), dtype=jnp.float32)
    edge_index = jax.random.randint(keys[3], (2, E), 0, N, dtype=jnp.int32)

    def init_w(k, shape):
        return (0.1 * jax.random.normal(k, shape)).astype(jnp.float32)

    params = {
        # EdgeModel: [x_src, x_dest, edge_attr] (2*DN + DE) -> H -> DE_OUT
        "edge_w1": init_w(keys[4], (2 * DN + DE, H)),
        "edge_b1": init_w(keys[5], (1, H)),
        "edge_w2": init_w(keys[6], (H, DE_OUT)),
        "edge_b2": init_w(keys[7], (1, DE_OUT)),
        # NodeModel: [x, agg, f] (DN + DE_OUT + DF) -> H -> DN_OUT
        "node_w1": init_w(keys[8], (DN + DE_OUT + DF, H)),
        "node_b1": init_w(keys[9], (1, H)),
        "node_w2": init_w(keys[10], (H, DN_OUT)),
        "node_b2": init_w(keys[11], (1, DN_OUT)),
    }

    new_x, new_edge_attr = meta_layer_forward(x, edge_index, edge_attr, f, params)
    jax.block_until_ready((new_x, new_edge_attr))

    ref_x, ref_ea = meta_layer_reference(x, edge_index, edge_attr, f, params)
    assert new_x.shape == (N, DN_OUT) and new_edge_attr.shape == (E, DE_OUT)
    # bf16 MXU compute (f32 accumulation) vs. f32-HIGHEST reference: tolerance
    # loosened to bf16 level per the perf review; still catches any structural
    # gather/scatter/MLP error (which would be O(1)).
    assert jnp.allclose(new_edge_attr, ref_ea, rtol=5e-2, atol=5e-2), (
        float(jnp.max(jnp.abs(new_edge_attr - ref_ea))))
    assert jnp.allclose(new_x, ref_x, rtol=5e-2, atol=5e-2), (
        float(jnp.max(jnp.abs(new_x - ref_x))))

    print("KERNEL_OK")
</pallas_src>

<mosaic_0001>
module attributes {stable_mosaic.version = 11 : i64} {
  func.func @_meta_fused_kernel(%arg0: i32, %arg1: memref<256x2xi32, #tpu.memory_space<vmem>>, %arg2: memref<256x128xbf16, #tpu.memory_space<vmem>>, %arg3: memref<128x128xbf16, #tpu.memory_space<vmem>>, %arg4: memref<128x128xbf16, #tpu.memory_space<vmem>>, %arg5: memref<128x128xbf16, #tpu.memory_space<vmem>>, %arg6: memref<1x128xf32, #tpu.memory_space<vmem>>, %arg7: memref<128x128xbf16, #tpu.memory_space<vmem>>, %arg8: memref<1x128xf32, #tpu.memory_space<vmem>>, %arg9: memref<128x128xf32, #tpu.memory_space<vmem>>, %arg10: memref<128x128xbf16, #tpu.memory_space<vmem>>, %arg11: memref<128x128xbf16, #tpu.memory_space<vmem>>, %arg12: memref<1x128xf32, #tpu.memory_space<vmem>>, %arg13: memref<256x128xf32, #tpu.memory_space<vmem>>, %arg14: memref<128x128xf32, #tpu.memory_space<vmem>>, %arg15: memref<128x128xf32, #tpu.memory_space<vmem>>) attributes {dimension_semantics = [#tpu.dimension_semantics<arbitrary>], iteration_bounds = array<i64: 3>, scalar_prefetch = 0 : i64, scratch_operands = 1 : i64, tpu.core_type = #tpu.core_type<tc>, window_params = [{transform_indices = @transform_0, window_bounds = array<i64: 256, 2>}, {transform_indices = @transform_1, window_bounds = array<i64: 256, 128>}, {pipeline_mode = #tpu.pipeline_mode<synchronous>, transform_indices = @transform_2, window_bounds = array<i64: 128, 128>}, {pipeline_mode = #tpu.pipeline_mode<synchronous>, transform_indices = @transform_3, window_bounds = array<i64: 128, 128>}, {pipeline_mode = #tpu.pipeline_mode<synchronous>, transform_indices = @transform_4, window_bounds = array<i64: 128, 128>}, {pipeline_mode = #tpu.pipeline_mode<synchronous>, transform_indices = @transform_5, window_bounds = array<i64: 1, 128>}, {pipeline_mode = #tpu.pipeline_mode<synchronous>, transform_indices = @transform_6, window_bounds = array<i64: 128, 128>}, {pipeline_mode = #tpu.pipeline_mode<synchronous>, transform_indices = @transform_7, window_bounds = array<i64: 1, 128>}, {pipeline_mode = #tpu.pipeline_mode<synchronous>, transform_indices = @transform_8, window_bounds = array<i64: 128, 128>}, {pipeline_mode = #tpu.pipeline_mode<synchronous>, transform_indices = @transform_9, window_bounds = array<i64: 128, 128>}, {pipeline_mode = #tpu.pipeline_mode<synchronous>, transform_indices = @transform_10, window_bounds = array<i64: 128, 128>}, {pipeline_mode = #tpu.pipeline_mode<synchronous>, transform_indices = @transform_11, window_bounds = array<i64: 1, 128>}, {transform_indices = @transform_12, window_bounds = array<i64: 256, 128>}, {pipeline_mode = #tpu.pipeline_mode<synchronous>, transform_indices = @transform_13, window_bounds = array<i64: 128, 128>}]} {
    %c0_i32 = arith.constant 0 : i32
    %0 = arith.cmpi eq, %arg0, %c0_i32 : i32
    %1 = arith.extui %0 : i1 to i32
    %c0_i32_0 = arith.constant 0 : i32
    %2 = arith.cmpi ne, %1, %c0_i32_0 : i32
    scf.if %2 {
      %cst_28 = arith.constant 0.000000e+00 : f32
      %46 = vector.broadcast %cst_28 : f32 to vector<128x128xf32>
      %c0_29 = arith.constant 0 : index
      %c0_30 = arith.constant 0 : index
      %47 = vector.load %arg15[%c0_29, %c0_30] : memref<128x128xf32, #tpu.memory_space<vmem>>, vector<128x128xf32>
      tpu.vector_store %arg15[%c0_29, %c0_30], %46 {strides = array<i32>} : memref<128x128xf32, #tpu.memory_space<vmem>>, vector<128x128xf32>,
    } else {
    }
    %c0 = arith.constant 0 : index
    %c0_1 = arith.constant 0 : index
    %3 = vector.load %arg1[%c0, %c0_1] : memref<256x2xi32, #tpu.memory_space<vmem>>, vector<256x2xi32>
    %4 = vector.extract_strided_slice %3 {offsets = [0, 0], sizes = [256, 1], strides = [1, 1]} : vector<256x2xi32> to vector<256x1xi32>
    %5 = vector.extract_strided_slice %3 {offsets = [0, 1], sizes = [256, 1], strides = [1, 1]} : vector<256x2xi32> to vector<256x1xi32>
    %6 = tpu.iota {dimensions = array<i32: 1>} : vector<256x128xi32>
    %7 = vector.broadcast %4 : vector<256x1xi32> to vector<256x128xi32>
    %8 = arith.cmpi eq, %6, %7 : vector<256x128xi32>
    %9 = arith.extui %8 : vector<256x128xi1> to vector<256x128xi32>
    %10 = arith.sitofp %9 : vector<256x128xi32> to vector<256x128xf32>
    %11 = arith.truncf %10 : vector<256x128xf32> to vector<256x128xbf16>
    %12 = vector.broadcast %5 : vector<256x1xi32> to vector<256x128xi32>
    %13 = arith.cmpi eq, %6, %12 : vector<256x128xi32>
    %14 = arith.extui %13 : vector<256x128xi1> to vector<256x128xi32>
    %15 = arith.sitofp %14 : vector<256x128xi32> to vector<256x128xf32>
    %16 = arith.truncf %15 : vector<256x128xf32> to vector<256x128xbf16>
    %c0_2 = arith.constant 0 : index
    %c0_3 = arith.constant 0 : index
    %17 = vector.load %arg3[%c0_2, %c0_3] : memref<128x128xbf16, #tpu.memory_space<vmem>>, vector<128x128xbf16>
    %cst = arith.constant dense<0.000000e+00> : vector<256x128xf32>
    %18 = tpu.matmul %11, %17, %cst {dimension_numbers = #tpu.dot_dimension_numbers<[1], [0], [0], [1], [0, 0, 1, 1], [], []>} : vector<256x128xbf16>, vector<128x128xbf16>, vector<256x128xf32> -> vector<256x128xf32>
    %c0_4 = arith.constant 0 : index
    %c0_5 = arith.constant 0 : index
    %19 = vector.load %arg4[%c0_4, %c0_5] : memref<128x128xbf16, #tpu.memory_space<vmem>>, vector<128x128xbf16>
    %cst_6 = arith.constant dense<0.000000e+00> : vector<256x128xf32>
    %20 = tpu.matmul %16, %19, %cst_6 {dimension_numbers = #tpu.dot_dimension_numbers<[1], [0], [0], [1], [0, 0, 1, 1], [], []>} : vector<256x128xbf16>, vector<128x128xbf16>, vector<256x128xf32> -> vector<256x128xf32>
    %21 = arith.addf %18, %20 : vector<256x128xf32>
    %c0_7 = arith.constant 0 : index
    %c0_8 = arith.constant 0 : index
    %22 = vector.load %arg2[%c0_7, %c0_8] : memref<256x128xbf16, #tpu.memory_space<vmem>>, vector<256x128xbf16>
    %c0_9 = arith.constant 0 : index
    %c0_10 = arith.constant 0 : index
    %23 = vector.load %arg5[%c0_9, %c0_10] : memref<128x128xbf16, #tpu.memory_space<vmem>>, vector<128x128xbf16>
    %cst_11 = arith.constant dense<0.000000e+00> : vector<256x128xf32>
    %24 = tpu.matmul %22, %23, %cst_11 {dimension_numbers = #tpu.dot_dimension_numbers<[1], [0], [0], [1], [0, 0, 1, 1], [], []>} : vector<256x128xbf16>, vector<128x128xbf16>, vector<256x128xf32> -> vector<256x128xf32>
    %25 = arith.addf %21, %24 : vector<256x128xf32>
    %c0_12 = arith.constant 0 : index
    %c0_13 = arith.constant 0 : index
    %26 = vector.load %arg6[%c0_12, %c0_13] : memref<1x128xf32, #tpu.memory_space<vmem>>, vector<1x128xf32>
    %27 = vector.broadcast %26 : vector<1x128xf32> to vector<256x128xf32>
    %28 = arith.addf %25, %27 : vector<256x128xf32>
    %cst_14 = arith.constant 0.000000e+00 : f32
    %29 = vector.broadcast %cst_14 : f32 to vector<256x128xf32>
    %30 = arith.maximumf %28, %29 : vector<256x128xf32>
    %31 = arith.truncf %30 : vector<256x128xf32> to vector<256x128xbf16>
    %c0_15 = arith.constant 0 : index
    %c0_16 = arith.constant 0 : index
    %32 = vector.load %arg7[%c0_15, %c0_16] : memref<128x128xbf16, #tpu.memory_space<vmem>>, vector<128x128xbf16>
    %cst_17 = arith.constant dense<0.000000e+00> : vector<256x128xf32>
    %33 = tpu.matmul %31, %32, %cst_17 {dimension_numbers = #tpu.dot_dimension_numbers<[1], [0], [0], [1], [0, 0, 1, 1], [], []>} : vector<256x128xbf16>, vector<128x128xbf16>, vector<256x128xf32> -> vector<256x128xf32>
    %c0_18 = arith.constant 0 : index
    %c0_19 = arith.constant 0 : index
    %34 = vector.load %arg8[%c0_18, %c0_19] : memref<1x128xf32, #tpu.memory_space<vmem>>, vector<1x128xf32>
    %35 = vector.broadcast %34 : vector<1x128xf32> to vector<256x128xf32>
    %36 = arith.addf %33, %35 : vector<256x128xf32>
    %c0_20 = arith.constant 0 : index
    %c0_21 = arith.constant 0 : index
    %37 = vector.load %arg13[%c0_20, %c0_21] : memref<256x128xf32, #tpu.memory_space<vmem>>, vector<256x128xf32>
    tpu.vector_store %arg13[%c0_20, %c0_21], %36 {strides = array<i32>} : memref<256x128xf32, #tpu.memory_space<vmem>>, vector<256x128xf32>,
    %c0_22 = arith.constant 0 : index
    %c0_23 = arith.constant 0 : index
    %38 = vector.load %arg15[%c0_22, %c0_23] : memref<128x128xf32, #tpu.memory_space<vmem>>, vector<128x128xf32>
    %39 = arith.truncf %36 : vector<256x128xf32> to vector<256x128xbf16>
    %cst_24 = arith.constant dense<0.000000e+00> : vector<128x128xf32>
    %40 = tpu.matmul %16, %39, %cst_24 {dimension_numbers = #tpu.dot_dimension_numbers<[0], [0], [1], [1], [0, 1, 1, 1], [], []>} : vector<256x128xbf16>, vector<256x128xbf16>, vector<128x128xf32> -> vector<128x128xf32>
    %41 = arith.addf %38, %40 : vector<128x128xf32>
    %c0_25 = arith.constant 0 : index
    %c0_26 = arith.constant 0 : index
    %42 = vector.load %arg15[%c0_25, %c0_26] : memref<128x128xf32, #tpu.memory_space<vmem>>, vector<128x128xf32>
    tpu.vector_store %arg15[%c0_25, %c0_26], %41 {strides = array<i32>} : memref<128x128xf32, #tpu.memory_space<vmem>>, vector<128x128xf32>,
    %c2_i32 = arith.constant 2 : i32
    %43 = arith.cmpi eq, %arg0, %c2_i32 : i32
    %44 = arith.extui %43 : i1 to i32
    %c0_i32_27 = arith.constant 0 : i32
    %45 = arith.cmpi ne, %44, %c0_i32_27 : i32
    scf.if %45 {
      %c0_28 = arith.constant 0 : index
      %c0_29 = arith.constant 0 : index
      %46 = vector.load %arg15[%c0_28, %c0_29] : memref<128x128xf32, #tpu.memory_space<vmem>>, vector<128x128xf32>
      %47 = arith.truncf %46 : vector<128x128xf32> to vector<128x128xbf16>
      %c0_30 = arith.constant 0 : index
      %c0_31 = arith.constant 0 : index
      %48 = vector.load %arg10[%c0_30, %c0_31] : memref<128x128xbf16, #tpu.memory_space<vmem>>, vector<128x128xbf16>
      %cst_32 = arith.constant dense<0.000000e+00> : vector<128x128xf32>
      %49 = tpu.matmul %47, %48, %cst_32 {dimension_numbers = #tpu.dot_dimension_numbers<[1], [0], [0], [1], [0, 0, 1, 1], [], []>} : vector<128x128xbf16>, vector<128x128xbf16>, vector<128x128xf32> -> vector<128x128xf32>
      %c0_33 = arith.constant 0 : index
      %c0_34 = arith.constant 0 : index
      %50 = vector.load %arg9[%c0_33, %c0_34] : memref<128x128xf32, #tpu.memory_space<vmem>>, vector<128x128xf32>
      %51 = arith.addf %49, %50 : vector<128x128xf32>
      %cst_35 = arith.constant 0.000000e+00 : f32
      %52 = vector.broadcast %cst_35 : f32 to vector<128x128xf32>
      %53 = arith.maximumf %51, %52 : vector<128x128xf32>
      %54 = arith.truncf %53 : vector<128x128xf32> to vector<128x128xbf16>
      %c0_36 = arith.constant 0 : index
      %c0_37 = arith.constant 0 : index
      %55 = vector.load %arg11[%c0_36, %c0_37] : memref<128x128xbf16, #tpu.memory_space<vmem>>, vector<128x128xbf16>
      %cst_38 = arith.constant dense<0.000000e+00> : vector<128x128xf32>
      %56 = tpu.matmul %54, %55, %cst_38 {dimension_numbers = #tpu.dot_dimension_numbers<[1], [0], [0], [1], [0, 0, 1, 1], [], []>} : vector<128x128xbf16>, vector<128x128xbf16>, vector<128x128xf32> -> vector<128x128xf32>
      %c0_39 = arith.constant 0 : index
      %c0_40 = arith.constant 0 : index
      %57 = vector.load %arg12[%c0_39, %c0_40] : memref<1x128xf32, #tpu.memory_space<vmem>>, vector<1x128xf32>
      %58 = vector.broadcast %57 : vector<1x128xf32> to vector<128x128xf32>
      %59 = arith.addf %56, %58 : vector<128x128xf32>
      %c0_41 = arith.constant 0 : index
      %c0_42 = arith.constant 0 : index
      %60 = vector.load %arg14[%c0_41, %c0_42] : memref<128x128xf32, #tpu.memory_space<vmem>>, vector<128x128xf32>
      tpu.vector_store %arg14[%c0_41, %c0_42], %59 {strides = array<i32>} : memref<128x128xf32, #tpu.memory_space<vmem>>, vector<128x128xf32>,
    } else {
    }
    return
  }
  func.func @transform_0(%arg0: i32) -> (i32, i32) {
    %c0_i32 = arith.constant 0 : i32
    %c0_i32_0 = arith.constant 0 : i32
    return %arg0, %c0_i32 : i32, i32
  }
  func.func @transform_1(%arg0: i32) -> (i32, i32) {
    %c0_i32 = arith.constant 0 : i32
    %c0_i32_0 = arith.constant 0 : i32
    return %arg0, %c0_i32 : i32, i32
  }
  func.func @transform_2(%arg0: i32) -> (i32, i32) {
    %c0_i32 = arith.constant 0 : i32
    %c0_i32_0 = arith.constant 0 : i32
    %c0_i32_1 = arith.constant 0 : i32
    return %c0_i32, %c0_i32_0 : i32, i32
  }
  func.func @transform_3(%arg0: i32) -> (i32, i32) {
    %c0_i32 = arith.constant 0 : i32
    %c0_i32_0 = arith.constant 0 : i32
    %c0_i32_1 = arith.constant 0 : i32
    return %c0_i32, %c0_i32_0 : i32, i32
  }
  func.func @transform_4(%arg0: i32) -> (i32, i32) {
    %c0_i32 = arith.constant 0 : i32
    %c0_i32_0 = arith.constant 0 : i32
    %c0_i32_1 = arith.constant 0 : i32
    return %c0_i32, %c0_i32_0 : i32, i32
  }
  func.func @transform_5(%arg0: i32) -> (i32, i32) {
    %c0_i32 = arith.constant 0 : i32
    %c0_i32_0 = arith.constant 0 : i32
    %c0_i32_1 = arith.constant 0 : i32
    return %c0_i32, %c0_i32_0 : i32, i32
  }
  func.func @transform_6(%arg0: i32) -> (i32, i32) {
    %c0_i32 = arith.constant 0 : i32
    %c0_i32_0 = arith.constant 0 : i32
    %c0_i32_1 = arith.constant 0 : i32
    return %c0_i32, %c0_i32_0 : i32, i32
  }
  func.func @transform_7(%arg0: i32) -> (i32, i32) {
    %c0_i32 = arith.constant 0 : i32
    %c0_i32_0 = arith.constant 0 : i32
    %c0_i32_1 = arith.constant 0 : i32
    return %c0_i32, %c0_i32_0 : i32, i32
  }
  func.func @transform_8(%arg0: i32) -> (i32, i32) {
    %c0_i32 = arith.constant 0 : i32
    %c0_i32_0 = arith.constant 0 : i32
    %c0_i32_1 = arith.constant 0 : i32
    return %c0_i32, %c0_i32_0 : i32, i32
  }
  func.func @transform_9(%arg0: i32) -> (i32, i32) {
    %c0_i32 = arith.constant 0 : i32
    %c0_i32_0 = arith.constant 0 : i32
    %c0_i32_1 = arith.constant 0 : i32
    return %c0_i32, %c0_i32_0 : i32, i32
  }
  func.func @transform_10(%arg0: i32) -> (i32, i32) {
    %c0_i32 = arith.constant 0 : i32
    %c0_i32_0 = arith.constant 0 : i32
    %c0_i32_1 = arith.constant 0 : i32
    return %c0_i32, %c0_i32_0 : i32, i32
  }
  func.func @transform_11(%arg0: i32) -> (i32, i32) {
    %c0_i32 = arith.constant 0 : i32
    %c0_i32_0 = arith.constant 0 : i32
    %c0_i32_1 = arith.constant 0 : i32
    return %c0_i32, %c0_i32_0 : i32, i32
  }
  func.func @transform_12(%arg0: i32) -> (i32, i32) {
    %c0_i32 = arith.constant 0 : i32
    %c0_i32_0 = arith.constant 0 : i32
    return %arg0, %c0_i32 : i32, i32
  }
  func.func @transform_13(%arg0: i32) -> (i32, i32) {
    %c0_i32 = arith.constant 0 : i32
    %c0_i32_0 = arith.constant 0 : i32
    %c0_i32_1 = arith.constant 0 : i32
    return %c0_i32, %c0_i32_0 : i32, i32
  }
}

</mosaic_0001>

<bundles_post_ra>
// kernel: meta_layer_forward.1
= control target key start
LH: loop header
LB: loop body
LE: loop exit
PB: predicated region body
PF: predicated region fallthrough
CT: control target
= control target key end

     0   :  { %s3640_s25 = smov 0   ;;  %s4591_s0 = inlined_call_operand.vmem [shape: s32[768,2], index: 0, kind: input, shape index: {}]   ;;  %s4592_s1 = inlined_call_operand.vmem [shape: bf16[768,128], index: 1, kind: input, shape index: {}]   ;;  %s4593_s2 = inlined_call_operand.vmem [shape: bf16[128,128], index: 2, kind: input, shape index: {}]   ;;  %s4594_s3 = inlined_call_operand.vmem [shape: bf16[128,128], index: 3, kind: input, shape index: {}]   ;;  %s4595_s4 = inlined_call_operand.vmem [shape: bf16[128,128], index: 4, kind: input, shape index: {}]   ;;  %s4596_s5 = inlined_call_operand.vmem [shape: f32[1,128], index: 5, kind: input, shape index: {}]   ;;  %s4597_s6 = inlined_call_operand.vmem [shape: bf16[128,128], index: 6, kind: input, shape index: {}]   ;;  %s4598_s7 = inlined_call_operand.vmem [shape: f32[1,128], index: 7, kind: input, shape index: {}]   ;;  %s4599_s8 = inlined_call_operand.vmem [shape: f32[128,128], index: 8, kind: input, shape index: {}]   ;;  %s4600_s9 = inlined_call_operand.vmem [shape: bf16[128,128], index: 9, kind: input, shape index: {}]   ;;  %s4601_s10 = inlined_call_operand.vmem [shape: bf16[128,128], index: 10, kind: input, shape index: {}]   ;;  %s4602_s11 = inlined_call_operand.vmem [shape: f32[1,128], index: 11, kind: input, shape index: {}]   ;;  %s4603_s12 = inlined_call_operand.vmem [shape: f32[768,128], index: 12, kind: output, shape index: {0}]   ;;  %s4604_s13 = inlined_call_operand.vmem [shape: f32[128,128], index: 13, kind: output, shape index: {1}]  }
   0x1 LB: > { %s3646_s26 = sadd.s32 4294967295, %s3563_s25   ;;  %p2805_p0 = scmp.ge.s32.totalorder %s3563_s25, 1  ;;  %s3563_s25 = sphi %s3640_s25, %s24_s25  }
   0x2   : > { %p397_p1 = scmp.lt.s32.totalorder %s3563_s25, 4 }
   0x4   : > { %p398_p2 = pnand %p2805_p0, %p397_p1 }
   0x5   : > { %s2806_s27 = sshll.u32 (!%p398_p2), %s3646_s26, 5  ;;  %p2812_p4 = scmp.ne.s32.totalorder (!%p398_p2), %s3646_s26, 0 }
   0x6   : > { %401 = sbr.rel (%p398_p2) target bundleno = 1446 (0x5a6), region = 68  ;;  %p447_p3 = scmp.lt.s32.totalorder (!%p398_p2), %s2806_s27, 95 }
   0xb   : > { %s4608_s27 = smov (!%p447_p3, %s2806_s27), 95  ;;  %468 = sbr.rel (%p2812_p4) target bundleno = 25 (0x19), region = 72 }
   0xc   : > { %s2807_s28 = sshll.u32 %s4608_s27, 3  ;;  %s2809_s29 = sshll.u32 %s4608_s27, 2 }
   0xd   : > { %s3654_s15 = scalar_lea.vmem %s4591_s0, %s2807_s28  ;;  %s3659_s18 = scalar_lea.vmem %s4592_s1, %s2809_s29 }
   0xe   : > { %s3664_s21 = scalar_lea.vmem %s4603_s12, %s2807_s28 }
  0x10   : > { %v3565_v0 = vmov 0.0  }
  0x11   : > { %469 = vst [vmem:[#allocation2 + $0x30] sm:$0xff] %v3565_v0  ;;  %470 = vst [vmem:[#allocation2] sm:$0xff] %v3565_v0 }
  0x12   : > { %471 = vst [vmem:[#allocation2 + $0x58] sm:$0xff] %v3565_v0  ;;  %472 = vst [vmem:[#allocation2 + $0x18] sm:$0xff] %v3565_v0 }
  0x13   : > { %473 = vst [vmem:[#allocation2 + $0x50] sm:$0xff] %v3565_v0  ;;  %474 = vst [vmem:[#allocation2 + $0x68] sm:$0xff] %v3565_v0 }
  0x14   : > { %475 = vst [vmem:[#allocation2 + $0x8] sm:$0xff] %v3565_v0  ;;  %476 = vst [vmem:[#allocation2 + $0x48] sm:$0xff] %v3565_v0 }
  0x15   : > { %477 = vst [vmem:[#allocation2 + $0x40] sm:$0xff] %v3565_v0  ;;  %478 = vst [vmem:[#allocation2 + $0x20] sm:$0xff] %v3565_v0 }
  0x16   : > { %479 = vst [vmem:[#allocation2 + $0x10] sm:$0xff] %v3565_v0  ;;  %480 = vst [vmem:[#allocation2 + $0x38] sm:$0xff] %v3565_v0 }
  0x17   : > { %481 = vst [vmem:[#allocation2 + $0x60] sm:$0xff] %v3565_v0  ;;  %482 = vst [vmem:[#allocation2 + $0x70] sm:$0xff] %v3565_v0 }
  0x18   : > { %483 = vst [vmem:[#allocation2 + $0x78] sm:$0xff] %v3565_v0  ;;  %484 = vst [vmem:[#allocation2 + $0x28] sm:$0xff] %v3565_v0 }
  0x19 PF: > { %v3668_v1 = vld [vmem:[%s3654_s15 + $0x90] sm:$0xff]  ;;  %v3671_v2 = vld [vmem:[%s3654_s15 + $0x80] sm:$0xff]  ;;  %v3566_v3 = vmov 1   ;;  %v3678_v4 = vld [vmem:[%s3654_s15 + $0x98] sm:$0xff]  ;;  %v3567_v44 = vmov 0   ;;  %v517_v45 = vlaneseq  ;;  %p2991_p5 = scmp.ne.s32.totalorder %s3646_s26, 2 }
  0x1a   : > { %3489 = vset.pattern.permute.xlu1 %v3566_v3  ;;  %3488 = vset.pattern.permute.xlu0 %v3566_v3  ;;  %v3681_v5 = vld [vmem:[%s3654_s15 + $0x88] sm:$0xff]  ;;  %v3689_v7 = vld [vmem:[%s3654_s15] sm:$0xff]  ;;  %v3694_v8 = vld [vmem:[%s3654_s15 + $0x18] sm:$0xff]  ;;  %v3568_v52 = vmov 1.0|1.0  }
  0x1b   : > { %782 = vperm.xlu1 %3489, %v3668_v1   ;;  %776 = vperm.xlu0 %3488, %v3671_v2   ;;  %v3686_v6 = vld [vmem:[%s3654_s15 + $0x8] sm:$0xff]  ;;  %v3697_v9 = vld [vmem:[%s3654_s15 + $0x10] sm:$0xff]  ;;  %v3493_v10 = vld [vmem:[%s4594_s3 + $0x38] sm:$0xff]   ;;  %v3821_v48 = vand.u32 127, %v517_v45 }
  0x1c   : > { %v3494_v11 = vld [vmem:[%s4594_s3 + $0x30] sm:$0xff]   ;;  %3459 = vmatprep.subr.bf16.mxu1 %v3493_v10  ;;  %3203 = vmatprep.subr.bf16.mxu0 %v3493_v10  ;;  %v3708_v12 = vld [vmem:[%s3654_s15 + $0xa8] sm:$0xff]  ;;  %v3711_v13 = vld [vmem:[%s3654_s15 + $0xa0] sm:$0xff] }
  0x1d   : > { %3467 = vmatpush3.bf16.msra.mxu1 %v3493_v10  ;;  %3204 = vmatpush3.bf16.msra.mxu0 %v3493_v10  ;;  %v3495_v14 = vld [vmem:[%s4594_s3 + $0x28] sm:$0xff]   ;;  %v3717_v15 = vld [vmem:[%s3654_s15 + $0xb8] sm:$0xff]  ;;  %v3720_v16 = vld [vmem:[%s3654_s15 + $0xb0] sm:$0xff] }
  0x1e   : > { %3460 = vmatprep.subr.bf16.mxu1 %v3494_v11  ;;  %3205 = vmatprep.subr.bf16.mxu0 %v3494_v11  ;;  %v3496_v17 = vld [vmem:[%s4594_s3 + $0x20] sm:$0xff]   ;;  %v3728_v18 = vld [vmem:[%s3654_s15 + $0x28] sm:$0xff]  ;;  %v3497_v20 = vld [vmem:[%s4594_s3 + $0x18] sm:$0xff]  }
  0x1f   : > { %785 = vperm.xlu1 %3489, %v3678_v4   ;;  %779 = vperm.xlu0 %3488, %v3681_v5   ;;  %v3731_v19 = vld [vmem:[%s3654_s15 + $0x20] sm:$0xff]  ;;  %v3739_v21 = vld [vmem:[%s3654_s15 + $0x38] sm:$0xff]  ;;  %v3742_v22 = vld [vmem:[%s3654_s15 + $0x30] sm:$0xff] }
  0x20   : > { %v3498_v23 = vld [vmem:[%s4594_s3 + $0x10] sm:$0xff]   ;;  %v3750_v24 = vld [vmem:[%s3654_s15 + $0xc8] sm:$0xff]  ;;  %v3753_v25 = vld [vmem:[%s3654_s15 + $0xc0] sm:$0xff] }
  0x21   : > { %3468 = vmatpush3.bf16.msra.mxu1 %v3494_v11  ;;  %3206 = vmatpush3.bf16.msra.mxu0 %v3494_v11  ;;  %v3499_v26 = vld [vmem:[%s4594_s3 + $0x8] sm:$0xff]   ;;  %v3761_v27 = vld [vmem:[%s3654_s15 + $0xd8] sm:$0xff]  ;;  %v3766_v28 = vld [vmem:[%s3654_s15 + $0xd0] sm:$0xff] }
  0x22   : > { %3461 = vmatprep.subr.bf16.mxu1 %v3495_v14  ;;  %3207 = vmatprep.subr.bf16.mxu0 %v3495_v14  ;;  %v3500_v29 = vld [vmem:[%s4594_s3] sm:$0xff]   ;;  %v494_v30 = vld [vmem:[%s3654_s15 + $0x48] sm:$0xff]  ;;  %v3778_v32 = vld [vmem:[%s4595_s4 + $0x38] sm:$0xff]  }
  0x23   : > { %731 = vperm.xlu1 %3489, %v3686_v6   ;;  %728 = vperm.xlu0 %3488, %v3689_v7   ;;  %v493_v31 = vld [vmem:[%s3654_s15 + $0x40] sm:$0xff]  ;;  %v3783_v33 = vld [vmem:[%s4593_s2 + $0x38] sm:$0xff]   ;;  %v495_v35 = vld [vmem:[%s3654_s15 + $0x50] sm:$0xff] }
  0x24   : > { %v496_v34 = vld [vmem:[%s3654_s15 + $0x58] sm:$0xff]  ;;  %v514_v36 = vld [vmem:[%s3654_s15 + $0xe8] sm:$0xff]  ;;  %v513_v37 = vld [vmem:[%s3654_s15 + $0xe0] sm:$0xff] }
  0x25   : > { %3469 = vmatpush3.bf16.msra.mxu1 %v3495_v14  ;;  %3208 = vmatpush3.bf16.msra.mxu0 %v3495_v14  ;;  %v516_v38 = vld [vmem:[%s3654_s15 + $0xf8] sm:$0xff]  ;;  %v515_v39 = vld [vmem:[%s3654_s15 + $0xf0] sm:$0xff]  ;;  %v498_v40 = vld [vmem:[%s3654_s15 + $0x68] sm:$0xff] }
  0x26   : > { %3462 = vmatprep.subr.bf16.mxu1 %v3496_v17  ;;  %3209 = vmatprep.subr.bf16.mxu0 %v3496_v17  ;;  %v497_v41 = vld [vmem:[%s3654_s15 + $0x60] sm:$0xff]  ;;  %v500_v42 = vld [vmem:[%s3654_s15 + $0x78] sm:$0xff]  ;;  %v499_v43 = vld [vmem:[%s3654_s15 + $0x70] sm:$0xff] }
  0x27   : > { %737 = vperm.xlu1 %3489, %v3694_v8   ;;  %734 = vperm.xlu0 %3488, %v3697_v9   ;;  %v3504_v51 = vld [vmem:[%s4593_s2 + $0x30] sm:$0xff]   ;;  %v3506_v55 = vld [vmem:[%s4593_s2 + $0x28] sm:$0xff]   ;;  %v3508_v59 = vld [vmem:[%s4593_s2 + $0x20] sm:$0xff]  }
  0x28   : > { %v3503_v58 = vld [vmem:[%s4595_s4 + $0x30] sm:$0xff]   ;;  %v3505_v62 = vld [vmem:[%s4595_s4 + $0x28] sm:$0xff]   ;;  %v3510_v63 = vld [vmem:[%s4593_s2 + $0x18] sm:$0xff]  }
  0x29   : > { %3470 = vmatpush3.bf16.msra.mxu1 %v3496_v17  ;;  %3210 = vmatpush3.bf16.msra.mxu0 %v3496_v17  ;;  %v3514_v11 = vld [vmem:[%s4593_s2 + $0x8] sm:$0xff]   ;;  %v3511_v14 = vld [vmem:[%s4595_s4 + $0x10] sm:$0xff]  }
  0x2a   : > { %3463 = vmatprep.subr.bf16.mxu1 %v3497_v20  ;;  %3211 = vmatprep.subr.bf16.mxu0 %v3497_v20 }
  0x2b   : > { %791 = vperm.xlu1 %3489, %v3708_v12   ;;  %788 = vperm.xlu0 %3488, %v3711_v13  }
  0x2d   : > { %3471 = vmatpush3.bf16.msra.mxu1 %v3497_v20  ;;  %3212 = vmatpush3.bf16.msra.mxu0 %v3497_v20 }
  0x2e   : > { %3464 = vmatprep.subr.bf16.mxu1 %v3498_v23  ;;  %3213 = vmatprep.subr.bf16.mxu0 %v3498_v23 }
  0x2f   : > { %797 = vperm.xlu1 %3489, %v3717_v15   ;;  %794 = vperm.xlu0 %3488, %v3720_v16  }
  0x31   : > { %3472 = vmatpush3.bf16.msra.mxu1 %v3498_v23  ;;  %3214 = vmatpush3.bf16.msra.mxu0 %v3498_v23 }
  0x32   : > { %3465 = vmatprep.subr.bf16.mxu1 %v3499_v26  ;;  %3215 = vmatprep.subr.bf16.mxu0 %v3499_v26 }
  0x33   : > { %743 = vperm.xlu1 %3489, %v3728_v18   ;;  %740 = vperm.xlu0 %3488, %v3731_v19  }
  0x35   : > { %3473 = vmatpush3.bf16.msra.mxu1 %v3499_v26  ;;  %3216 = vmatpush3.bf16.msra.mxu0 %v3499_v26 }
  0x36   : > { %3466 = vmatprep.subr.bf16.mxu1 %v3500_v29  ;;  %3217 = vmatprep.subr.bf16.mxu0 %v3500_v29 }
  0x37   : > { %749 = vperm.xlu1 %3489, %v3739_v21   ;;  %746 = vperm.xlu0 %3488, %v3742_v22  }
  0x39   : > { %3474 = vmatpush3.bf16.msra.mxu1 %v3500_v29  ;;  %3218 = vmatpush3.bf16.msra.mxu0 %v3500_v29 }
  0x3a   : > { %3299 = vmatprep.subr.bf16.mxu0 %v3778_v32  ;;  %3251 = vmatprep.subr.bf16.mxu1 %v3783_v33 }
  0x3b   : > { %803 = vperm.xlu1 %3489, %v3750_v24   ;;  %800 = vperm.xlu0 %3488, %v3753_v25  }
  0x3f   : > { %809 = vperm.xlu1 %3489, %v3761_v27   ;;  %806 = vperm.xlu0 %3488, %v3766_v28  }
  0x43   : > { %755 = vperm.xlu1 %3489, %v494_v30   ;;  %752 = vperm.xlu0 %3488, %v493_v31  }
  0x47   : > { %761 = vperm.xlu1 %3489, %v496_v34   ;;  %758 = vperm.xlu0 %3488, %v495_v35  }
  0x4b   : > { %815 = vperm.xlu1 %3489, %v514_v36   ;;  %812 = vperm.xlu0 %3488, %v513_v37  }
  0x4f   : > { %821 = vperm.xlu1 %3489, %v516_v38   ;;  %818 = vperm.xlu0 %3488, %v515_v39  }
  0x53   : > { %767 = vperm.xlu1 %3489, %v498_v40   ;;  %764 = vperm.xlu0 %3488, %v497_v41  }
  0x57   : > { %773 = vperm.xlu1 %3489, %v500_v42   ;;  %770 = vperm.xlu0 %3488, %v499_v43  }
  0x5b   : > { %3491 = vset.pattern.permute.xlu1 %v3567_v44  ;;  %3490 = vset.pattern.permute.xlu0 %v3567_v44 }
  0x5c   : > { %523 = vperm.xlu1 %3491, %v3686_v6   ;;  %520 = vperm.xlu0 %3490, %v3689_v7   ;;  %v3509_v7 = vld [vmem:[%s4595_s4 + $0x18] sm:$0xff]  }
  0x60   : > { %526 = vperm.xlu1 %3491, %v3697_v9   ;;  %529 = vperm.xlu0 %3490, %v3694_v8   ;;  %v3569_v8 = vmov 0.0  }
  0x64   : > { %532 = vperm.xlu1 %3491, %v3731_v19   ;;  %535 = vperm.xlu0 %3490, %v3728_v18   ;;  %v3516_v18 = vld [vmem:[%s4593_s2] sm:$0xff]  }
  0x68   : > { %538 = vperm.xlu1 %3491, %v3742_v22   ;;  %541 = vperm.xlu0 %3490, %v3739_v21   ;;  %v3513_v22 = vld [vmem:[%s4595_s4 + $0x8] sm:$0xff]  }
  0x6c   : > { %544 = vperm.xlu1 %3491, %v493_v31   ;;  %547 = vperm.xlu0 %3490, %v494_v30   ;;  %v3515_v31 = vld [vmem:[%s4595_s4] sm:$0xff]  }
  0x70   : > { %550 = vperm.xlu1 %3491, %v495_v35   ;;  %553 = vperm.xlu0 %3490, %v496_v34  }
  0x74   : > { %556 = vperm.xlu1 %3491, %v497_v41   ;;  %559 = vperm.xlu0 %3490, %v498_v40  }
  0x78   : > { %562 = vperm.xlu1 %3491, %v499_v43   ;;  %565 = vperm.xlu0 %3490, %v500_v42  }
  0x7c   : > { %568 = vperm.xlu1 %3491, %v3671_v2   ;;  %571 = vperm.xlu0 %3490, %v3681_v5   ;;  %v3507_v2 = vld [vmem:[%s4595_s4 + $0x20] sm:$0xff]  }
  0x80   : > { %574 = vperm.xlu1 %3491, %v3668_v1   ;;  %577 = vperm.xlu0 %3490, %v3678_v4   ;;  %v3512_v4 = vld [vmem:[%s4593_s2 + $0x10] sm:$0xff]  }
  0x84   : > { %580 = vperm.xlu1 %3491, %v3711_v13   ;;  %583 = vperm.xlu0 %3490, %v3708_v12  }
  0x88   : > { %586 = vperm.xlu1 %3491, %v3720_v16   ;;  %589 = vperm.xlu0 %3490, %v3717_v15  }
  0x8c   : > { %592 = vperm.xlu1 %3491, %v3753_v25   ;;  %595 = vperm.xlu0 %3490, %v3750_v24  }
  0x90   : > { %598 = vperm.xlu1 %3491, %v3766_v28   ;;  %601 = vperm.xlu0 %3490, %v3761_v27  }
  0x94   : > { %604 = vperm.xlu1 %3491, %v513_v37   ;;  %607 = vperm.xlu0 %3490, %v514_v36  }
  0x96   : > { %v3817_v46 = vpop.permute.xlu1 %782  ;;  %v3819_v47 = vpop.permute.xlu0 %776 }
  0x97   : > { %vm841_vm0 = vcmp.eq.s32.totalorder %v3821_v48, %v3817_v46  ;;  %vm839_vm3 = vcmp.eq.s32.totalorder %v3821_v48, %v3819_v47 }
  0x98   : > { %610 = vperm.xlu1 %3491, %v515_v39   ;;  %613 = vperm.xlu0 %3490, %v516_v38   ;;  %v2861_v23 = vsel %vm839_vm3, 1.0, %v3569_v8 }
  0x9a   : > { %v3823_v49 = vpop.permute.xlu1 %785  ;;  %v3825_v50 = vpop.permute.xlu0 %779 }
  0x9b   : > { %vm842_vm1 = vcmp.eq.s32.totalorder %v3821_v48, %v3823_v49  ;;  %vm840_vm2 = vcmp.eq.s32.totalorder %v3821_v48, %v3825_v50 }
  0x9c   : > { %vm2903_vm4 = vmpackc.low %vm842_vm1, %vm841_vm0  ;;  %v2862_v19 = vsel %vm840_vm2, 1.0, %v3569_v8  ;;  %v2864_v28 = vsel %vm842_vm1, 1.0, %v3569_v8 }
  0x9d   : > { %vm2901_vm5 = vmpackc.low %vm840_vm2, %vm839_vm3  ;;  %v927_v25 = vpack.c.bf16 %v2862_v19, %v2861_v23  ;;  %v3518_v23 = vld [vmem:[%s3659_s18 + $0x8] sm:$0xff]  }
  0x9e   : > { %3235 = vmatprep.mubr.msk.bf16.mxu1 %vm2901_vm5, %v3568_v52  ;;  %v732_v53 = vpop.permute.xlu1 %731  ;;  %v729_v54 = vpop.permute.xlu0 %728 }
  0x9f   : > { %3236 = vmatmul.mubr.msk.bf16.vlgmr.msra.gmra.mxu1 %vm2903_vm4, %v3568_v52  ;;  %vm824_vm6 = vcmp.eq.s32.totalorder %v3821_v48, %v732_v53  ;;  %vm823_vm7 = vcmp.eq.s32.totalorder %v3821_v48, %v729_v54 }
  0xa0   : > { %vm2885_vm8 = vmpackc.low %vm824_vm6, %vm823_vm7  ;;  %3252 = vmatpush3.bf16.msra.mxu1 %v3783_v33  ;;  %v2846_v9 = vsel %vm824_vm6, 1.0, %v3569_v8  ;;  %v2845_v10 = vsel %vm823_vm7, 1.0, %v3569_v8 }
  0xa1   : > { %3219 = vmatprep.mubr.msk.bf16.mxu0 %vm2885_vm8, %v3568_v52  ;;  %3253 = vmatprep.subr.bf16.mxu1 %v3504_v51  ;;  %v919_v15 = vpack.c.bf16 %v2846_v9, %v2845_v10 }
  0xa2   : > { %v738_v56 = vpop.permute.xlu1 %737  ;;  %v735_v57 = vpop.permute.xlu0 %734 }
  0xa3   : > { %vm826_vm9 = vcmp.eq.s32.totalorder %v3821_v48, %v738_v56  ;;  %vm825_vm10 = vcmp.eq.s32.totalorder %v3821_v48, %v735_v57 }
  0xa4   : > { %vm2887_vm11 = vmpackc.low %vm826_vm9, %vm825_vm10  ;;  %3254 = vmatpush3.bf16.msra.mxu1 %v3504_v51  ;;  %v2848_v16 = vsel %vm826_vm9, 1.0, %v3569_v8  ;;  %v2847_v17 = vsel %vm825_vm10, 1.0, %v3569_v8 }
  0xa5   : > { %3220 = vmatmul.mubr.msk.bf16.vlgmr.msra.gmra.mxu0 %vm2887_vm11, %v3568_v52  ;;  %3255 = vmatprep.subr.bf16.mxu1 %v3506_v55  ;;  %v920_v24 = vpack.c.bf16 %v2848_v16, %v2847_v17  ;;  %v3517_v16 = vld [vmem:[%s3659_s18] sm:$0xff]  }
  0xa6   : > { %v3876_v60 = vpop.permute.xlu1 %791  ;;  %v3878_v61 = vpop.permute.xlu0 %788  ;;  %3300 = vmatpush3.bf16.msra.mxu0 %v3778_v32  ;;  %v2863_v32 = vsel %vm841_vm0, 1.0, %v3569_v8 }
  0xa7   : > { %vm844_vm12 = vcmp.eq.s32.totalorder %v3821_v48, %v3876_v60  ;;  %vm843_vm13 = vcmp.eq.s32.totalorder %v3821_v48, %v3878_v61  ;;  %3301 = vmatprep.subr.bf16.mxu0 %v3503_v58  ;;  %v928_v34 = vpack.c.bf16 %v2864_v28, %v2863_v32  ;;  %v3520_v28 = vld [vmem:[%s3659_s18 + $0x18] sm:$0xff]  }
  0xa8   : > { %vm2905_vm14 = vmpackc.low %vm844_vm12, %vm843_vm13  ;;  %3256 = vmatpush3.bf16.msra.mxu1 %v3506_v55  ;;  %v2866_v37 = vsel %vm844_vm12, 1.0, %v3569_v8  ;;  %v2865_v38 = vsel %vm843_vm13, 1.0, %v3569_v8 }
  0xa9   : > { %3239 = vmatprep.mubr.msk.bf16.mxu1 %vm2905_vm14, %v3568_v52  ;;  %3257 = vmatprep.subr.bf16.mxu1 %v3508_v59  ;;  %v929_v42 = vpack.c.bf16 %v2866_v37, %v2865_v38 }
  0xaa   : > { %v3898_v0 = vpop.permute.xlu1 %797  ;;  %v3900_v1 = vpop.permute.xlu0 %794  ;;  %3302 = vmatpush3.bf16.msra.mxu0 %v3503_v58 }
  0xab   : > { %vm846_vm15 = vcmp.eq.s32.totalorder %v3821_v48, %v3898_v0  ;;  %vm4605_vm4 = vcmp.eq.s32.totalorder %v3821_v48, %v3900_v1  ;;  %3303 = vmatprep.subr.bf16.mxu0 %v3505_v62  ;;  %vm4606_vm12 = vcmp.eq.s32.totalorder %v3821_v48, %v3900_v1 }
  0xac   : > { %vm2907_vm5 = vmpackc.low %vm846_vm15, %vm4605_vm4  ;;  %3258 = vmatpush3.bf16.msra.mxu1 %v3508_v59  ;;  %v2868_v45 = vsel %vm846_vm15, 1.0, %v3569_v8  ;;  %v2867_v46 = vsel %vm4606_vm12, 1.0, %v3569_v8 }
  0xad   : > { %3240 = vmatmul.mubr.msk.bf16.gmra.mxu1 %vm2907_vm5, %v3568_v52  ;;  %3259 = vmatprep.subr.bf16.mxu1 %v3510_v63  ;;  %v930_v51 = vpack.c.bf16 %v2868_v45, %v2867_v46  ;;  %v3526_v45 = vld [vmem:[%s3659_s18 + $0x48] sm:$0xff]   ;;  %v3527_v46 = vld [vmem:[%s3659_s18 + $0x50] sm:$0xff]  }
  0xae   : > { %v744_v5 = vpop.permute.xlu1 %743  ;;  %v741_v6 = vpop.permute.xlu0 %740  ;;  %3304 = vmatpush3.bf16.msra.mxu0 %v3505_v62 }
  0xaf   : > { %vm828_vm8 = vcmp.eq.s32.totalorder %v3821_v48, %v744_v5  ;;  %vm827_vm11 = vcmp.eq.s32.totalorder %v3821_v48, %v741_v6  ;;  %3305 = vmatprep.subr.bf16.mxu0 %v3507_v2 }
  0xb0   : > { %vm2889_vm14 = vmpackc.low %vm828_vm8, %vm827_vm11  ;;  %3260 = vmatpush3.bf16.msra.mxu1 %v3510_v63  ;;  %v2850_v26 = vsel %vm828_vm8, 1.0, %v3569_v8  ;;  %v2849_v27 = vsel %vm827_vm11, 1.0, %v3569_v8 }
  0xb1   : > { %3223 = vmatprep.mubr.msk.bf16.mxu0 %vm2889_vm14, %v3568_v52  ;;  %3261 = vmatprep.subr.bf16.mxu1 %v3512_v4  ;;  %v921_v33 = vpack.c.bf16 %v2850_v26, %v2849_v27 }
  0xb2   : > { %v750_v12 = vpop.permute.xlu1 %749  ;;  %v747_v13 = vpop.permute.xlu0 %746  ;;  %3306 = vmatpush3.bf16.msra.mxu0 %v3507_v2 }
  0xb3   : > { %vm830_vm5 = vcmp.eq.s32.totalorder %v3821_v48, %v750_v12  ;;  %vm829_vm4 = vcmp.eq.s32.totalorder %v3821_v48, %v747_v13  ;;  %3307 = vmatprep.subr.bf16.mxu0 %v3509_v7 }
  0xb4   : > { %vm2891_vm6 = vmpackc.low %vm830_vm5, %vm829_vm4  ;;  %3262 = vmatpush3.bf16.msra.mxu1 %v3512_v4  ;;  %v2852_v35 = vsel %vm830_vm5, 1.0, %v3569_v8  ;;  %v2851_v36 = vsel %vm829_vm4, 1.0, %v3569_v8 }
  0xb5   : > { %3224 = vmatmul.mubr.msk.bf16.gmra.mxu0 %vm2891_vm6, %v3568_v52  ;;  %3263 = vmatprep.subr.bf16.mxu1 %v3514_v11  ;;  %v922_v41 = vpack.c.bf16 %v2852_v35, %v2851_v36 }
  0xb6   : > { %v3961_v20 = vpop.permute.xlu1 %803  ;;  %2153 = vxpose.xlu0.c.b16.start [1/8] %v919_v15, 128  ;;  %v3963_v21 = vpop.permute.xlu0 %800  ;;  %3308 = vmatpush3.bf16.msra.mxu0 %v3509_v7 }
  0xb7   : > { %vm848_vm7 = vcmp.eq.s32.totalorder %v3821_v48, %v3961_v20  ;;  %vm847_vm9 = vcmp.eq.s32.totalorder %v3821_v48, %v3963_v21  ;;  %3309 = vmatprep.subr.bf16.mxu0 %v3511_v14 }
  0xb8   : > { %vm2909_vm2 = vmpackc.low %vm848_vm7, %vm847_vm9  ;;  %3264 = vmatpush3.bf16.msra.mxu1 %v3514_v11  ;;  %v2870_v55 = vsel %vm848_vm7, 1.0, %v3569_v8  ;;  %v2869_v56 = vsel %vm847_vm9, 1.0, %v3569_v8 }
  0xb9   : > { %3243 = vmatprep.mubr.msk.bf16.mxu1 %vm2909_vm2, %v3568_v52  ;;  %3265 = vmatprep.subr.bf16.mxu1 %v3516_v18  ;;  %v931_v60 = vpack.c.bf16 %v2870_v55, %v2869_v56 }
  0xba   : > { %v810_v29 = vpop.permute.xlu1 %809  ;;  %2154 = vxpose.xlu0.c.b16.cont [2/8] %v920_v24, 128  ;;  %v807_v30 = vpop.permute.xlu0 %806  ;;  %3310 = vmatpush3.bf16.msra.mxu0 %v3511_v14 }
  0xbb   : > { %vm850_vm3 = vcmp.eq.s32.totalorder %v3821_v48, %v810_v29  ;;  %vm849_vm10 = vcmp.eq.s32.totalorder %v3821_v48, %v807_v30  ;;  %2169 = vxpose.xlu1.c.b16.start [1/8] %v927_v25, 128  ;;  %3311 = vmatprep.subr.bf16.mxu0 %v3513_v22  ;;  %v3521_v29 = vld [vmem:[%s3659_s18 + $0x20] sm:$0xff]  }
  0xbc   : > { %vm2911_vm1 = vmpackc.low %vm850_vm3, %vm849_vm10  ;;  %3266 = vmatpush3.bf16.msra.mxu1 %v3516_v18  ;;  %v2872_v61 = vsel %vm850_vm3, 1.0, %v3569_v8  ;;  %v2871_v62 = vsel %vm849_vm10, 1.0, %v3569_v8 }
  0xbd   : > { %3244 = vmatmul.mubr.msk.bf16.gmra.mxu1 %vm2911_vm1, %v3568_v52  ;;  %v932_v1 = vpack.c.bf16 %v2872_v61, %v2871_v62 }
  0xbe   : > { %v756_v39 = vpop.permute.xlu1 %755  ;;  %2155 = vxpose.xlu0.c.b16.cont [3/8] %v921_v33, 128  ;;  %v753_v40 = vpop.permute.xlu0 %752  ;;  %3312 = vmatpush3.bf16.msra.mxu0 %v3513_v22  ;;  %v3522_v33 = vld [vmem:[%s3659_s18 + $0x28] sm:$0xff]  }
  0xbf   : > { %vm832_vm0 = vcmp.eq.s32.totalorder %v3821_v48, %v756_v39  ;;  %vm831_vm4 = vcmp.eq.s32.totalorder %v3821_v48, %v753_v40  ;;  %2170 = vxpose.xlu1.c.b16.cont [2/8] %v928_v34, 128  ;;  %3313 = vmatprep.subr.bf16.mxu0 %v3515_v31  ;;  %v3523_v34 = vld [vmem:[%s3659_s18 + $0x30] sm:$0xff]   ;;  %v3524_v39 = vld [vmem:[%s3659_s18 + $0x38] sm:$0xff]   ;;  %v3525_v40 = vld [vmem:[%s3659_s18 + $0x40] sm:$0xff]  }
  0xc0   : > { %vm2893_vm8 = vmpackc.low %vm832_vm0, %vm831_vm4  ;;  %v2854_v43 = vsel %vm832_vm0, 1.0, %v3569_v8  ;;  %v2853_v44 = vsel %vm831_vm4, 1.0, %v3569_v8 }
  0xc1   : > { %3227 = vmatprep.mubr.msk.bf16.mxu0 %vm2893_vm8, %v3568_v52  ;;  %v923_v50 = vpack.c.bf16 %v2854_v43, %v2853_v44 }
  0xc2   : > { %v762_v47 = vpop.permute.xlu1 %761  ;;  %2156 = vxpose.xlu0.c.b16.cont [4/8] %v922_v41, 128  ;;  %v759_v49 = vpop.permute.xlu0 %758  ;;  %3314 = vmatpush3.bf16.msra.mxu0 %v3515_v31 }
  0xc3   : > { %vm834_vm13 = vcmp.eq.s32.totalorder %v3821_v48, %v762_v47  ;;  %vm833_vm11 = vcmp.eq.s32.totalorder %v3821_v48, %v759_v49  ;;  %2171 = vxpose.xlu1.c.b16.cont [3/8] %v929_v42, 128 }
  0xc4   : > { %vm2895_vm14 = vmpackc.low %vm834_vm13, %vm833_vm11  ;;  %v2856_v53 = vsel %vm834_vm13, 1.0, %v3569_v8  ;;  %v2855_v54 = vsel %vm833_vm11, 1.0, %v3569_v8 }
  0xc5   : > { %3228 = vmatmul.mubr.msk.bf16.gmra.mxu0 %vm2895_vm14, %v3568_v52  ;;  %v924_v59 = vpack.c.bf16 %v2856_v53, %v2855_v54  ;;  %v3528_v53 = vld [vmem:[%s3659_s18 + $0x58] sm:$0xff]   ;;  %v3529_v54 = vld [vmem:[%s3659_s18 + $0x60] sm:$0xff]  }
  0xc6   : > { %v816_v57 = vpop.permute.xlu1 %815  ;;  %2157 = vxpose.xlu0.c.b16.cont [5/8] %v923_v50, 128  ;;  %v813_v58 = vpop.permute.xlu0 %812 }
  0xc7   : > { %vm852_vm15 = vcmp.eq.s32.totalorder %v3821_v48, %v816_v57  ;;  %vm851_vm5 = vcmp.eq.s32.totalorder %v3821_v48, %v813_v58  ;;  %2172 = vxpose.xlu1.c.b16.cont [4/8] %v930_v51, 128 }
  0xc8   : > { %vm2913_vm6 = vmpackc.low %vm852_vm15, %vm851_vm5  ;;  %v2874_v2 = vsel %vm852_vm15, 1.0, %v3569_v8  ;;  %v2873_v4 = vsel %vm851_vm5, 1.0, %v3569_v8 }
  0xc9   : > { %3247 = vmatprep.mubr.msk.bf16.mxu1 %vm2913_vm6, %v3568_v52  ;;  %v933_v10 = vpack.c.bf16 %v2874_v2, %v2873_v4  ;;  %v3532_v2 = vld [vmem:[%s3659_s18 + $0x78] sm:$0xff]  }
  0xca   : > { %v822_v63 = vpop.permute.xlu1 %821  ;;  %2158 = vxpose.xlu0.c.b16.cont [6/8] %v924_v59, 128  ;;  %v819_v0 = vpop.permute.xlu0 %818  ;;  %v3530_v59 = vld [vmem:[%s3659_s18 + $0x68] sm:$0xff]  }
  0xcb   : > { %vm854_vm7 = vcmp.eq.s32.totalorder %v3821_v48, %v822_v63  ;;  %vm853_vm9 = vcmp.eq.s32.totalorder %v3821_v48, %v819_v0  ;;  %2173 = vxpose.xlu1.c.b16.cont [5/8] %v931_v60, 128  ;;  %v3531_v60 = vld [vmem:[%s3659_s18 + $0x70] sm:$0xff]  }
  0xcc   : > { %vm2915_vm2 = vmpackc.low %vm854_vm7, %vm853_vm9  ;;  %v2876_v12 = vsel %vm854_vm7, 1.0, %v3569_v8  ;;  %v2875_v13 = vsel %vm853_vm9, 1.0, %v3569_v8 }
  0xcd   : > { %3248 = vmatmul.mubr.msk.bf16.gmra.mxu1 %vm2915_vm2, %v3568_v52  ;;  %v934_v19 = vpack.c.bf16 %v2876_v12, %v2875_v13 }
  0xce   : > { %v768_v5 = vpop.permute.xlu1 %767  ;;  %v765_v6 = vpop.permute.xlu0 %764 }
  0xcf   : > { %vm836_vm3 = vcmp.eq.s32.totalorder %v3821_v48, %v768_v5  ;;  %vm835_vm10 = vcmp.eq.s32.totalorder %v3821_v48, %v765_v6  ;;  %2174 = vxpose.xlu1.c.b16.cont [6/8] %v932_v1, 128  ;;  %v3533_v1 = vld [vmem:[%s4597_s6 + $0x38] sm:$0xff]   ;;  %v3534_v6 = vld [vmem:[%s4597_s6 + $0x30] sm:$0xff]  }
  0xd0   : > { %v2858_v7 = vsel %vm836_vm3, 1.0, %v3569_v8  ;;  %v2857_v9 = vsel %vm835_vm10, 1.0, %v3569_v8  ;;  %vm2897_vm1 = vmpackc.low %vm836_vm3, %vm835_vm10  ;;  %3347 = vmatprep.subr.bf16.mxu1 %v3533_v1 }
  0xd1   : > { %v925_v11 = vpack.c.bf16 %v2858_v7, %v2857_v9  ;;  %3231 = vmatprep.mubr.msk.bf16.mxu0 %vm2897_vm1, %v3568_v52  ;;  %v3535_v7 = vld [vmem:[%s4597_s6 + $0x28] sm:$0xff]   ;;  %v3536_v9 = vld [vmem:[%s4597_s6 + $0x20] sm:$0xff]  }
  0xd2   : > { %v774_v14 = vpop.permute.xlu1 %773  ;;  %v771_v15 = vpop.permute.xlu0 %770 }
  0xd3   : > { %vm838_vm0 = vcmp.eq.s32.totalorder %v3821_v48, %v774_v14  ;;  %vm837_vm4 = vcmp.eq.s32.totalorder %v3821_v48, %v771_v15  ;;  %2175 = vxpose.xlu1.c.b16.cont [7/8] %v933_v10, 128  ;;  %2159 = vxpose.xlu0.c.b16.cont [7/8] %v925_v11, 128  ;;  %v3539_v10 = vld [vmem:[%s4597_s6 + $0x8] sm:$0xff]   ;;  %v3540_v11 = vld [vmem:[%s4597_s6] sm:$0xff]  }
  0xd4   : > { %v2860_v17 = vsel %vm838_vm0, 1.0, %v3569_v8  ;;  %v2859_v18 = vsel %vm837_vm4, 1.0, %v3569_v8  ;;  %vm2899_vm8 = vmpackc.low %vm838_vm0, %vm837_vm4  ;;  %v3519_v8 = vld [vmem:[%s3659_s18 + $0x10] sm:$0xff]  }
  0xd5   : > { %v926_v20 = vpack.c.bf16 %v2860_v17, %v2859_v18  ;;  %3232 = vmatmul.mubr.msk.bf16.gmra.mxu0 %vm2899_vm8, %v3568_v52 }
  0xd6   : > { %3315 = vmatprep.mubr.bf16.mxu0 %v3517_v16 }
  0xd7   : > { %v524_v21 = vpop.permute.xlu1 %523  ;;  %2176 = vxpose.xlu1.c.b16.end [8/8] %v934_v19, 128  ;;  %2160 = vxpose.xlu0.c.b16.end [8/8] %v926_v20, 128  ;;  %v521_v22 = vpop.permute.xlu0 %520 }
  0xd8   : > { %vm616_vm12 = vcmp.eq.s32.totalorder %v3821_v48, %v524_v21  ;;  %vm615_vm13 = vcmp.eq.s32.totalorder %v3821_v48, %v521_v22 }
  0xd9   : > { %vm2925_vm11 = vmpackc.low %vm616_vm12, %vm615_vm13 }
  0xda   : > { %3267 = vmatprep.mubr.msk.bf16.mxu1 %vm2925_vm11, %v3568_v52 }
  0xdb   : > { %v527_v24 = vpop.permute.xlu1 %526  ;;  %v530_v25 = vpop.permute.xlu0 %529 }
  0xdc   : > { %vm617_vm14 = vcmp.eq.s32.totalorder %v3821_v48, %v527_v24  ;;  %vm618_vm15 = vcmp.eq.s32.totalorder %v3821_v48, %v530_v25 }
  0xdd   : > { %vm2927_vm5 = vmpackc.low %vm618_vm15, %vm617_vm14  ;;  %3316 = vmatmul.mubr.bf16.vlgmr.msra.gmra.mxu0 %v3518_v23 }
  0xde   : > { %3268 = vmatmul.mubr.msk.bf16.vlgmr.msra.gmra.mxu1 %vm2927_vm5, %v3568_v52  ;;  %3319 = vmatprep.mubr.bf16.mxu0 %v3519_v8 }
  0xdf   : > { %v533_v26 = vpop.permute.xlu1 %532  ;;  %v536_v27 = vpop.permute.xlu0 %535  ;;  %3348 = vmatpush3.bf16.msra.mxu1 %v3533_v1 }
  0xe0   : > { %vm619_vm6 = vcmp.eq.s32.totalorder %v3821_v48, %v533_v26  ;;  %vm620_vm7 = vcmp.eq.s32.totalorder %v3821_v48, %v536_v27  ;;  %3492 = vset.pattern.permute.xlu0 %v3566_v3  ;;  %3349 = vmatprep.subr.bf16.mxu1 %v3534_v6 }
  0xe1   : > { %vm2929_vm9 = vmpackc.low %vm620_vm7, %vm619_vm6 }
  0xe2   : > { %3271 = vmatprep.mubr.msk.bf16.mxu1 %vm2929_vm9, %v3568_v52 }
  0xe3   : > { %v539_v30 = vpop.permute.xlu1 %538  ;;  %v542_v31 = vpop.permute.xlu0 %541  ;;  %3350 = vmatpush3.bf16.msra.mxu1 %v3534_v6 }
  0xe4   : > { %vm621_vm2 = vcmp.eq.s32.totalorder %v3821_v48, %v539_v30  ;;  %vm622_vm3 = vcmp.eq.s32.totalorder %v3821_v48, %v542_v31  ;;  %3351 = vmatprep.subr.bf16.mxu1 %v3535_v7 }
  0xe5   : > { %vm2931_vm10 = vmpackc.low %vm622_vm3, %vm621_vm2  ;;  %3320 = vmatmul.mubr.bf16.gmra.mxu0 %v3520_v28 }
  0xe6   : > { %3272 = vmatmul.mubr.msk.bf16.gmra.mxu1 %vm2931_vm10, %v3568_v52  ;;  %3323 = vmatprep.mubr.bf16.mxu0 %v3521_v29 }
  0xe7   : > { %v545_v32 = vpop.permute.xlu1 %544  ;;  %v548_v3 = vpop.permute.xlu0 %547  ;;  %3352 = vmatpush3.bf16.msra.mxu1 %v3535_v7 }
  0xe8   : > { %vm623_vm1 = vcmp.eq.s32.totalorder %v3821_v48, %v545_v32  ;;  %vm624_vm0 = vcmp.eq.s32.totalorder %v3821_v48, %v548_v3  ;;  %3353 = vmatprep.subr.bf16.mxu1 %v3536_v9 }
  0xe9   : > { %vm2933_vm4 = vmpackc.low %vm624_vm0, %vm623_vm1 }
  0xea   : > { %3275 = vmatprep.mubr.msk.bf16.mxu1 %vm2933_vm4, %v3568_v52 }
  0xeb   : > { %v551_v35 = vpop.permute.xlu1 %550  ;;  %v554_v36 = vpop.permute.xlu0 %553  ;;  %3354 = vmatpush3.bf16.msra.mxu1 %v3536_v9 }
  0xec   : > { %vm625_vm8 = vcmp.eq.s32.totalorder %v3821_v48, %v551_v35  ;;  %vm626_vm12 = vcmp.eq.s32.totalorder %v3821_v48, %v554_v36 }
  0xed   : > { %vm2935_vm13 = vmpackc.low %vm626_vm12, %vm625_vm8  ;;  %3324 = vmatmul.mubr.bf16.gmra.mxu0 %v3522_v33 }
  0xee   : > { %3276 = vmatmul.mubr.msk.bf16.gmra.mxu1 %vm2935_vm13, %v3568_v52  ;;  %3327 = vmatprep.mubr.bf16.mxu0 %v3523_v34 }
  0xef   : > { %v557_v37 = vpop.permute.xlu1 %556  ;;  %v560_v38 = vpop.permute.xlu0 %559 }
  0xf0   : > { %vm627_vm11 = vcmp.eq.s32.totalorder %v3821_v48, %v557_v37  ;;  %vm628_vm14 = vcmp.eq.s32.totalorder %v3821_v48, %v560_v38 }
  0xf1   : > { %vm2937_vm15 = vmpackc.low %vm628_vm14, %vm627_vm11 }
  0xf2   : > { %3279 = vmatprep.mubr.msk.bf16.mxu1 %vm2937_vm15, %v3568_v52 }
  0xf3   : > { %v563_v41 = vpop.permute.xlu1 %562  ;;  %v566_v42 = vpop.permute.xlu0 %565 }
  0xf4   : > { %vm629_vm5 = vcmp.eq.s32.totalorder %v3821_v48, %v563_v41  ;;  %vm630_vm6 = vcmp.eq.s32.totalorder %v3821_v48, %v566_v42 }
  0xf5   : > { %vm2939_vm7 = vmpackc.low %vm630_vm6, %vm629_vm5  ;;  %3328 = vmatmul.mubr.bf16.gmra.mxu0 %v3524_v39 }
  0xf6   : > { %3280 = vmatmul.mubr.msk.bf16.gmra.mxu1 %vm2939_vm7, %v3568_v52  ;;  %3331 = vmatprep.mubr.bf16.mxu0 %v3525_v40 }
  0xf7   : > { %v569_v43 = vpop.permute.xlu1 %568  ;;  %v572_v44 = vpop.permute.xlu0 %571 }
  0xf8   : > { %vm631_vm9 = vcmp.eq.s32.totalorder %v3821_v48, %v569_v43  ;;  %vm632_vm2 = vcmp.eq.s32.totalorder %v3821_v48, %v572_v44 }
  0xf9   : > { %vm2941_vm3 = vmpackc.low %vm632_vm2, %vm631_vm9 }
  0xfa   : > { %3283 = vmatprep.mubr.msk.bf16.mxu1 %vm2941_vm3, %v3568_v52 }
  0xfb   : > { %v575_v47 = vpop.permute.xlu1 %574  ;;  %v578_v49 = vpop.permute.xlu0 %577 }
  0xfc   : > { %vm633_vm10 = vcmp.eq.s32.totalorder %v3821_v48, %v575_v47  ;;  %vm634_vm1 = vcmp.eq.s32.totalorder %v3821_v48, %v578_v49 }
  0xfd   : > { %vm2943_vm0 = vmpackc.low %vm634_vm1, %vm633_vm10  ;;  %3332 = vmatmul.mubr.bf16.gmra.mxu0 %v3526_v45 }
  0xfe   : > { %3284 = vmatmul.mubr.msk.bf16.gmra.mxu1 %vm2943_vm0, %v3568_v52  ;;  %3335 = vmatprep.mubr.bf16.mxu0 %v3527_v46 }
  0xff   : > { %v581_v50 = vpop.permute.xlu1 %580  ;;  %v584_v51 = vpop.permute.xlu0 %583 }
 0x100   : > { %vm635_vm4 = vcmp.eq.s32.totalorder %v3821_v48, %v581_v50  ;;  %vm636_vm8 = vcmp.eq.s32.totalorder %v3821_v48, %v584_v51 }
 0x101   : > { %vm2945_vm12 = vmpackc.low %vm636_vm8, %vm635_vm4 }
 0x102   : > { %3287 = vmatprep.mubr.msk.bf16.mxu1 %vm2945_vm12, %v3568_v52 }
 0x103   : > { %v587_v55 = vpop.permute.xlu1 %586  ;;  %v590_v56 = vpop.permute.xlu0 %589 }
 0x104   : > { %vm637_vm13 = vcmp.eq.s32.totalorder %v3821_v48, %v587_v55  ;;  %vm638_vm11 = vcmp.eq.s32.totalorder %v3821_v48, %v590_v56 }
 0x105   : > { %vm2947_vm14 = vmpackc.low %vm638_vm11, %vm637_vm13  ;;  %3336 = vmatmul.mubr.bf16.gmra.mxu0 %v3528_v53 }
 0x106   : > { %3288 = vmatmul.mubr.msk.bf16.gmra.mxu1 %vm2947_vm14, %v3568_v52  ;;  %3339 = vmatprep.mubr.bf16.mxu0 %v3529_v54 }
 0x107   : > { %v593_v57 = vpop.permute.xlu1 %592  ;;  %v596_v58 = vpop.permute.xlu0 %595 }
 0x108   : > { %vm639_vm15 = vcmp.eq.s32.totalorder %v3821_v48, %v593_v57  ;;  %vm640_vm5 = vcmp.eq.s32.totalorder %v3821_v48, %v596_v58  ;;  %v4229_v57 = vld [vmem:[%s4596_s5] ss:$0 sm:$0xff] }
 0x109   : > { %vm2949_vm6 = vmpackc.low %vm640_vm5, %vm639_vm15 }
 0x10a   : > { %3291 = vmatprep.mubr.msk.bf16.mxu1 %vm2949_vm6, %v3568_v52 }
 0x10b   : > { %v599_v61 = vpop.permute.xlu1 %598  ;;  %v602_v62 = vpop.permute.xlu0 %601 }
 0x10c   : > { %vm641_vm7 = vcmp.eq.s32.totalorder %v3821_v48, %v599_v61  ;;  %vm642_vm9 = vcmp.eq.s32.totalorder %v3821_v48, %v602_v62 }
 0x10d   : > { %vm2951_vm2 = vmpackc.low %vm642_vm9, %vm641_vm7  ;;  %3340 = vmatmul.mubr.bf16.gmra.mxu0 %v3530_v59 }
 0x10e   : > { %3292 = vmatmul.mubr.msk.bf16.gmra.mxu1 %vm2951_vm2, %v3568_v52  ;;  %3343 = vmatprep.mubr.bf16.mxu0 %v3531_v60 }
 0x10f   : > { %v605_v63 = vpop.permute.xlu1 %604  ;;  %v608_v0 = vpop.permute.xlu0 %607 }
 0x110   : > { %vm643_vm3 = vcmp.eq.s32.totalorder %v3821_v48, %v605_v63  ;;  %vm644_vm10 = vcmp.eq.s32.totalorder %v3821_v48, %v608_v0 }
 0x111   : > { %vm2953_vm1 = vmpackc.low %vm644_vm10, %vm643_vm3 }
 0x112   : > { %3295 = vmatprep.mubr.msk.bf16.mxu1 %vm2953_vm1, %v3568_v52 }
 0x113   : > { %v611_v4 = vpop.permute.xlu1 %610  ;;  %v614_v5 = vpop.permute.xlu0 %613 }
 0x114   : > { %vm645_vm0 = vcmp.eq.s32.totalorder %v3821_v48, %v611_v4  ;;  %vm646_vm4 = vcmp.eq.s32.totalorder %v3821_v48, %v614_v5  ;;  %v3537_v48 = vld [vmem:[%s4597_s6 + $0x18] sm:$0xff]  }
 0x115   : > { %vm2955_vm8 = vmpackc.low %vm646_vm4, %vm645_vm0  ;;  %3344 = vmatmul.mubr.bf16.gmra.mxu0 %v3532_v2  ;;  %3355 = vmatprep.subr.bf16.mxu1 %v3537_v48 }
 0x116   : > { %3296 = vmatmul.mubr.msk.bf16.gmra.mxu1 %vm2955_vm8, %v3568_v52  ;;  %v3538_v52 = vld [vmem:[%s4597_s6 + $0x10] sm:$0xff]  }
 0x117   : > { %3356 = vmatpush3.bf16.msra.mxu1 %v3537_v48 }
 0x118   : > { %3357 = vmatprep.subr.bf16.mxu1 %v3538_v52 }
 0x11b   : > { %3358 = vmatpush3.bf16.msra.mxu1 %v3538_v52 }
 0x11c   : > { %3359 = vmatprep.subr.bf16.mxu1 %v3539_v10 }
 0x11f   : > { %3360 = vmatpush3.bf16.msra.mxu1 %v3539_v10 }
 0x120   : > { %3361 = vmatprep.subr.bf16.mxu1 %v3540_v11 }
 0x123   : > { %3362 = vmatpush3.bf16.msra.mxu1 %v3540_v11 }
 0x15f   : > { %v4178_v12 = vpop.f32.mrf.mxu1 }
 0x161   : > { %v4180_v13 = vpop.f32.mrf.mxu1 }
 0x163   : > { %v4182_v15 = vpop.f32.mrf.mxu1 }
 0x165   : > { %v3221_v14 = vpop.f32.mrf.mxu0  ;;  %v4184_v17 = vpop.f32.mrf.mxu1 }
 0x167   : > { %v1049_v16 = vpop.f32.mrf.mxu0 }
 0x169   : > { %v3222_v18 = vpop.f32.mrf.mxu0 }
 0x16b   : > { %v1052_v20 = vpop.f32.mrf.mxu0 }
 0x16d   : > { %v4186_v19 = vpop.f32.mrf.mxu1 }
 0x16f   : > { %v4188_v21 = vpop.f32.mrf.mxu1 }
 0x171   : > { %v4190_v23 = vpop.f32.mrf.mxu1 }
 0x173   : > { %v4192_v24 = vpop.f32.mrf.mxu1 }
 0x175   : > { %v3225_v22 = vpop.f32.mrf.mxu0 }
 0x177   : > { %v1065_v8 = vpop.f32.mrf.mxu0 }
 0x179   : > { %v3226_v25 = vpop.f32.mrf.mxu0 }
 0x17b   : > { %v1068_v27 = vpop.f32.mrf.mxu0 }
 0x17d   : > { %v4194_v26 = vpop.f32.mrf.mxu1 }
 0x17f   : > { %v4196_v28 = vpop.f32.mrf.mxu1 }
 0x181   : > { %v4200_v30 = vpop.f32.mrf.mxu1 }
 0x183   : > { %v4204_v32 = vpop.f32.mrf.mxu1 }
 0x185   : > { %v4198_v29 = vpop.f32.mrf.mxu0 }
 0x187   : > { %v4202_v31 = vpop.f32.mrf.mxu0 }
 0x189   : > { %v4206_v3 = vpop.f32.mrf.mxu0 }
 0x18b   : > { %v4210_v34 = vpop.f32.mrf.mxu0 }
 0x18d   : > { %v4208_v33 = vpop.f32.mrf.mxu1 }
 0x18f   : > { %v4212_v35 = vpop.f32.mrf.mxu1 }
 0x191   : > { %v4218_v38 = vpop.f32.mrf.mxu1 }
 0x193   : > { %v4224_v41 = vpop.f32.mrf.mxu1 }
 0x195   : > { %v4214_v36 = vpop.f32.mrf.mxu0 }
 0x197   : > { %v4216_v37 = vpop.f32.mrf.mxu0 }
 0x199   : > { %v4220_v39 = vpop.f32.mrf.mxu0 }
 0x19b   : > { %v4222_v40 = vpop.f32.mrf.mxu0 }
 0x19d   : > { %v3317_v42 = vpop.f32.mrf.mxu0 }
 0x19e   : > { %v3269_v43 = vpop.f32.mrf.mxu1 }
 0x19f   : > { %v1611_v44 = vpop.f32.mrf.mxu0  ;;  %v1267_v45 = vadd.f32 %v3269_v43, %v3221_v14 }
 0x1a0   : > { %v1258_v46 = vpop.f32.mrf.mxu1 }
 0x1a1   : > { %v1259_v47 = vadd.f32 %v1258_v46, %v1049_v16  ;;  %v3318_v49 = vpop.f32.mrf.mxu0  ;;  %v1740_v55 = vadd.f32 %v3317_v42, %v1267_v45 }
 0x1a2   : > { %v3270_v50 = vpop.f32.mrf.mxu1 }
 0x1a3   : > { %v1738_v51 = vadd.f32 %v1611_v44, %v1259_v47  ;;  %v1270_v53 = vadd.f32 %v3270_v50, %v3222_v18  ;;  %v1614_v54 = vpop.f32.mrf.mxu0  ;;  %v1779_v2 = vadd.f32 %v4229_v57, %v1740_v55 }
 0x1a4   : > { %v1261_v56 = vpop.f32.mrf.mxu1 }
 0x1a5   : > { %v1741_v58 = vadd.f32 %v3318_v49, %v1270_v53  ;;  %v1262_v59 = vadd.f32 %v1261_v56, %v1052_v20  ;;  %v3321_v60 = vpop.f32.mrf.mxu0  ;;  %v1777_v62 = vadd.f32 %v4229_v57, %v1738_v51  ;;  %v1811_v16 = vmax.f32 %v1779_v2, 0.0 }
 0x1a6   : > { %v3273_v61 = vpop.f32.mrf.mxu1 }
 0x1a7   : > { %v1780_v63 = vadd.f32 %v4229_v57, %v1741_v58  ;;  %v1739_v0 = vadd.f32 %v1614_v54, %v1262_v59  ;;  %v1627_v1 = vpop.f32.mrf.mxu0  ;;  %v1283_v6 = vadd.f32 %v3273_v61, %v3225_v22  ;;  %v1809_v10 = vmax.f32 %v1777_v62, 0.0 }
 0x1a8   : > { %v1274_v4 = vpop.f32.mrf.mxu1 }
 0x1a9   : > { %v1778_v5 = vadd.f32 %v4229_v57, %v1739_v0  ;;  %v1275_v7 = vadd.f32 %v1274_v4, %v1065_v8  ;;  %v3322_v9 = vpop.f32.mrf.mxu0  ;;  %v1812_v48 = vmax.f32 %v1780_v63, 0.0  ;;  %v1744_v43 = vadd.f32 %v3321_v60, %v1283_v6 }
 0x1aa   : > { %v3274_v52 = vpop.f32.mrf.mxu1 }
 0x1ab   : > { %v1810_v11 = vmax.f32 %v1778_v5, 0.0  ;;  %v1630_v14 = vpop.f32.mrf.mxu0  ;;  %v1742_v18 = vadd.f32 %v1627_v1, %v1275_v7  ;;  %v1286_v20 = vadd.f32 %v3274_v52, %v3226_v25  ;;  %v1842_v47 = vpack.c.bf16 %v1812_v48, %v1811_v16 }
 0x1ac   : > { %v1277_v42 = vpop.f32.mrf.mxu1  ;;  %v1783_v55 = vadd.f32 %v4229_v57, %v1744_v43 }
 0x1ad   : > { %v1278_v44 = vadd.f32 %v1277_v42, %v1068_v27  ;;  %v3325_v45 = vpop.f32.mrf.mxu0  ;;  %v1841_v46 = vpack.c.bf16 %v1810_v11, %v1809_v10  ;;  %v1745_v49 = vadd.f32 %v3322_v9, %v1286_v20  ;;  %v1781_v8 = vadd.f32 %v4229_v57, %v1742_v18 }
 0x1ae   : > { %v3277_v50 = vpop.f32.mrf.mxu1  ;;  %v1815_v4 = vmax.f32 %v1783_v55, 0.0 }
 0x1af   : > { %v1743_v51 = vadd.f32 %v1630_v14, %v1278_v44  ;;  %v1643_v22 = vpop.f32.mrf.mxu0  ;;  %3363 = vmatprep.mubr.bf16.mxu1 %v1841_v46  ;;  %v1784_v53 = vadd.f32 %v4229_v57, %v1745_v49  ;;  %v1299_v27 = vadd.f32 %v3277_v50, %v4198_v29  ;;  %v1813_v0 = vmax.f32 %v1781_v8, 0.0 }
 0x1b0   : > { %v1290_v54 = vpop.f32.mrf.mxu1  ;;  %3364 = vmatmul.mubr.bf16.vlgmr.msra.gmra.mxu1 %v1842_v47 }
 0x1b1   : > { %v1782_v25 = vadd.f32 %v4229_v57, %v1743_v51  ;;  %v1291_v56 = vadd.f32 %v1290_v54, %v4202_v31  ;;  %v3326_v58 = vpop.f32.mrf.mxu0  ;;  %v1816_v60 = vmax.f32 %v1784_v53, 0.0  ;;  %v1748_v5 = vadd.f32 %v3325_v45, %v1299_v27 }
 0x1b2   : > { %v3278_v59 = vpop.f32.mrf.mxu1 }
 0x1b3   : > { %v1814_v61 = vmax.f32 %v1782_v25, 0.0  ;;  %v1302_v62 = vadd.f32 %v3278_v59, %v4206_v3  ;;  %v1646_v63 = vpop.f32.mrf.mxu0  ;;  %v1746_v1 = vadd.f32 %v1643_v22, %v1291_v56  ;;  %v1844_v11 = vpack.c.bf16 %v1816_v60, %v1815_v4 }
 0x1b4   : > { %v1293_v2 = vpop.f32.mrf.mxu1  ;;  %v1787_v16 = vadd.f32 %v4229_v57, %v1748_v5 }
 0x1b5   : > { %v1749_v6 = vadd.f32 %v3326_v58, %v1302_v62  ;;  %v1294_v7 = vadd.f32 %v1293_v2, %v4210_v34  ;;  %v3329_v9 = vpop.f32.mrf.mxu0  ;;  %v1843_v29 = vpack.c.bf16 %v1814_v61, %v1813_v0  ;;  %v1785_v14 = vadd.f32 %v4229_v57, %v1746_v1 }
 0x1b6   : > { %v3281_v48 = vpop.f32.mrf.mxu1  ;;  %v1819_v22 = vmax.f32 %v1787_v16, 0.0 }
 0x1b7   : > { %v1788_v31 = vadd.f32 %v4229_v57, %v1749_v6  ;;  %v1747_v52 = vadd.f32 %v1646_v63, %v1294_v7  ;;  %v1659_v10 = vpop.f32.mrf.mxu0  ;;  %3367 = vmatprep.mubr.bf16.mxu1 %v1843_v29  ;;  %v1315_v20 = vadd.f32 %v3281_v48, %v4214_v36  ;;  %v1817_v49 = vmax.f32 %v1785_v14, 0.0 }
 0x1b8   : > { %v1306_v3 = vpop.f32.mrf.mxu1  ;;  %3368 = vmatmul.mubr.bf16.gmra.mxu1 %v1844_v11 }
 0x1b9   : > { %v1786_v18 = vadd.f32 %v4229_v57, %v1747_v52  ;;  %v1307_v34 = vadd.f32 %v1306_v3, %v4216_v37  ;;  %v3330_v42 = vpop.f32.mrf.mxu0  ;;  %v1820_v44 = vmax.f32 %v1788_v31, 0.0  ;;  %v1752_v8 = vadd.f32 %v3329_v9, %v1315_v20 }
 0x1ba   : > { %v3282_v43 = vpop.f32.mrf.mxu1 }
 0x1bb   : > { %v1818_v45 = vmax.f32 %v1786_v18, 0.0  ;;  %v1318_v46 = vadd.f32 %v3282_v43, %v4220_v39  ;;  %v1662_v47 = vpop.f32.mrf.mxu0  ;;  %v1750_v50 = vadd.f32 %v1659_v10, %v1307_v34  ;;  %v1846_v58 = vpack.c.bf16 %v1820_v44, %v1819_v22 }
 0x1bc   : > { %v1309_v51 = vpop.f32.mrf.mxu1  ;;  %v1791_v60 = vadd.f32 %v4229_v57, %v1752_v8 }
 0x1bd   : > { %v1753_v53 = vadd.f32 %v3330_v42, %v1318_v46  ;;  %v1310_v54 = vadd.f32 %v1309_v51, %v4222_v40  ;;  %v3333_v55 = vpop.f32.mrf.mxu0  ;;  %v1845_v25 = vpack.c.bf16 %v1818_v45, %v1817_v49  ;;  %v1789_v59 = vadd.f32 %v4229_v57, %v1750_v50 }
 0x1be   : > { %v3285_v36 = vpop.f32.mrf.mxu1  ;;  %v1823_v48 = vmax.f32 %v1791_v60, 0.0 }
 0x1bf   : > { %v1792_v37 = vadd.f32 %v4229_v57, %v1753_v53  ;;  %v1751_v27 = vadd.f32 %v1662_v47, %v1310_v54  ;;  %v1675_v56 = vpop.f32.mrf.mxu0  ;;  %3371 = vmatprep.mubr.bf16.mxu1 %v1845_v25  ;;  %v1331_v62 = vadd.f32 %v3285_v36, %v4178_v12  ;;  %v1821_v6 = vmax.f32 %v1789_v59, 0.0 }
 0x1c0   : > { %v1322_v39 = vpop.f32.mrf.mxu1  ;;  %3372 = vmatmul.mubr.bf16.gmra.mxu1 %v1846_v58 }
 0x1c1   : > { %v1790_v61 = vadd.f32 %v4229_v57, %v1751_v27  ;;  %v1323_v40 = vadd.f32 %v1322_v39, %v4180_v13  ;;  %v3334_v63 = vpop.f32.mrf.mxu0  ;;  %v1824_v1 = vmax.f32 %v1792_v37, 0.0  ;;  %v1756_v29 = vadd.f32 %v3333_v55, %v1331_v62 }
 0x1c2   : > { %v3286_v0 = vpop.f32.mrf.mxu1 }
 0x1c3   : > { %v1822_v2 = vmax.f32 %v1790_v61, 0.0  ;;  %v1334_v4 = vadd.f32 %v3286_v0, %v4182_v15  ;;  %v1678_v5 = vpop.f32.mrf.mxu0  ;;  %v1754_v7 = vadd.f32 %v1675_v56, %v1323_v40  ;;  %v1848_v16 = vpack.c.bf16 %v1824_v1, %v1823_v48 }
 0x1c4   : > { %v1325_v9 = vpop.f32.mrf.mxu1  ;;  %v1795_v20 = vadd.f32 %v4229_v57, %v1756_v29 }
 0x1c5   : > { %v1757_v31 = vadd.f32 %v3334_v63, %v1334_v4  ;;  %v1326_v52 = vadd.f32 %v1325_v9, %v4184_v17  ;;  %v3337_v10 = vpop.f32.mrf.mxu0  ;;  %v1847_v11 = vpack.c.bf16 %v1822_v2, %v1821_v6  ;;  %v1793_v18 = vadd.f32 %v4229_v57, %v1754_v7 }
 0x1c6   : > { %v3289_v12 = vpop.f32.mrf.mxu1  ;;  %v1827_v8 = vmax.f32 %v1795_v20, 0.0 }
 0x1c7   : > { %v1796_v13 = vadd.f32 %v4229_v57, %v1757_v31  ;;  %v1755_v14 = vadd.f32 %v1678_v5, %v1326_v52  ;;  %v1691_v3 = vpop.f32.mrf.mxu0  ;;  %3375 = vmatprep.mubr.bf16.mxu1 %v1847_v11  ;;  %v1347_v42 = vadd.f32 %v3289_v12, %v4186_v19  ;;  %v1825_v50 = vmax.f32 %v1793_v18, 0.0 }
 0x1c8   : > { %v1338_v15 = vpop.f32.mrf.mxu1  ;;  %3376 = vmatmul.mubr.bf16.gmra.mxu1 %v1848_v16 }
 0x1c9   : > { %v1794_v34 = vadd.f32 %v4229_v57, %v1755_v14  ;;  %v1339_v17 = vadd.f32 %v1338_v15, %v4188_v21  ;;  %v3338_v43 = vpop.f32.mrf.mxu0  ;;  %v1828_v45 = vmax.f32 %v1796_v13, 0.0  ;;  %v1760_v53 = vadd.f32 %v3337_v10, %v1347_v42 }
 0x1ca   : > { %v3290_v44 = vpop.f32.mrf.mxu1 }
 0x1cb   : > { %v1826_v46 = vmax.f32 %v1794_v34, 0.0  ;;  %v1350_v47 = vadd.f32 %v3290_v44, %v4190_v23  ;;  %v1694_v49 = vpop.f32.mrf.mxu0  ;;  %v1758_v51 = vadd.f32 %v1691_v3, %v1339_v17  ;;  %v1850_v56 = vpack.c.bf16 %v1828_v45, %v1827_v8 }
 0x1cc   : > { %v1341_v22 = vpop.f32.mrf.mxu1  ;;  %v1799_v59 = vadd.f32 %v4229_v57, %v1760_v53 }
 0x1cd   : > { %v1761_v54 = vadd.f32 %v3338_v43, %v1350_v47  ;;  %v1342_v55 = vadd.f32 %v1341_v22, %v4192_v24  ;;  %v3341_v36 = vpop.f32.mrf.mxu0  ;;  %v1849_v25 = vpack.c.bf16 %v1826_v46, %v1825_v50  ;;  %v1797_v58 = vadd.f32 %v4229_v57, %v1758_v51 }
 0x1ce   : > { %v3293_v19 = vpop.f32.mrf.mxu1  ;;  %v1831_v6 = vmax.f32 %v1799_v59, 0.0 }
 0x1cf   : > { %v1800_v21 = vadd.f32 %v4229_v57, %v1761_v54  ;;  %v1759_v37 = vadd.f32 %v1694_v49, %v1342_v55  ;;  %v1707_v27 = vpop.f32.mrf.mxu0  ;;  %3379 = vmatprep.mubr.bf16.mxu1 %v1849_v25  ;;  %v1363_v60 = vadd.f32 %v3293_v19, %v4194_v26  ;;  %v1829_v2 = vmax.f32 %v1797_v58, 0.0  ;;  %v2177_v25 = vpop.trf.xlu1 }
 0x1d0   : > { %v1354_v23 = vpop.f32.mrf.mxu1  ;;  %3380 = vmatmul.mubr.bf16.gmra.mxu1 %v1850_v56  ;;  %2217 = vmatprep.mubr.bf16.mxu0 %v2177_v25 }
 0x1d1   : > { %v1798_v39 = vadd.f32 %v4229_v57, %v1759_v37  ;;  %v1355_v24 = vadd.f32 %v1354_v23, %v4196_v28  ;;  %v3342_v61 = vpop.f32.mrf.mxu0  ;;  %v1832_v40 = vmax.f32 %v1800_v21, 0.0  ;;  %v1764_v7 = vadd.f32 %v3341_v36, %v1363_v60  ;;  %v4290_v21 = vld [vmem:[%s4598_s7] ss:$0 sm:$0xff] }
 0x1d2   : > { %v3294_v62 = vpop.f32.mrf.mxu1 }
 0x1d3   : > { %v1830_v63 = vmax.f32 %v1798_v39, 0.0  ;;  %v1366_v0 = vadd.f32 %v3294_v62, %v4200_v30  ;;  %v1710_v1 = vpop.f32.mrf.mxu0  ;;  %v1762_v4 = vadd.f32 %v1707_v27, %v1355_v24  ;;  %v1852_v12 = vpack.c.bf16 %v1832_v40, %v1831_v6 }
 0x1d4   : > { %v1357_v5 = vpop.f32.mrf.mxu1  ;;  %v1803_v13 = vadd.f32 %v4229_v57, %v1764_v7 }
 0x1d5   : > { %v1765_v9 = vadd.f32 %v3342_v61, %v1366_v0  ;;  %v1358_v48 = vadd.f32 %v1357_v5, %v4204_v32  ;;  %v3345_v29 = vpop.f32.mrf.mxu0  ;;  %v1851_v31 = vpack.c.bf16 %v1830_v63, %v1829_v2  ;;  %v1801_v11 = vadd.f32 %v4229_v57, %v1762_v4 }
 0x1d6   : > { %v3297_v26 = vpop.f32.mrf.mxu1  ;;  %v1835_v44 = vmax.f32 %v1803_v13, 0.0 }
 0x1d7   : > { %v1804_v28 = vadd.f32 %v4229_v57, %v1765_v9  ;;  %v1763_v52 = vadd.f32 %v1710_v1, %v1358_v48  ;;  %v1723_v10 = vpop.f32.mrf.mxu0  ;;  %3383 = vmatprep.mubr.bf16.mxu1 %v1851_v31  ;;  %v1379_v3 = vadd.f32 %v3297_v26, %v4208_v33  ;;  %v1833_v17 = vmax.f32 %v1801_v11, 0.0 }
 0x1d8   : > { %v1370_v30 = vpop.f32.mrf.mxu1  ;;  %3384 = vmatmul.mubr.bf16.gmra.mxu1 %v1852_v12 }
 0x1d9   : > { %v1802_v14 = vadd.f32 %v4229_v57, %v1763_v52  ;;  %v1371_v32 = vadd.f32 %v1370_v30, %v4212_v35  ;;  %v3346_v16 = vpop.f32.mrf.mxu0  ;;  %v1836_v15 = vmax.f32 %v1804_v28, 0.0  ;;  %v1768_v45 = vadd.f32 %v3345_v29, %v1379_v3 }
 0x1da   : > { %v3298_v18 = vpop.f32.mrf.mxu1 }
 0x1db   : > { %v1834_v20 = vmax.f32 %v1802_v14, 0.0  ;;  %v1766_v34 = vadd.f32 %v1723_v10, %v1371_v32  ;;  %v1382_v42 = vadd.f32 %v3298_v18, %v4218_v38  ;;  %v1726_v49 = vpop.f32.mrf.mxu0  ;;  %v1854_v22 = vpack.c.bf16 %v1836_v15, %v1835_v44 }
 0x1dc   : > { %v1373_v43 = vpop.f32.mrf.mxu1  ;;  %v1807_v8 = vadd.f32 %v4229_v57, %v1768_v45 }
 0x1dd   : > { %v1769_v46 = vadd.f32 %v3346_v16, %v1382_v42  ;;  %v1374_v47 = vadd.f32 %v1373_v43, %v4224_v41  ;;  %v1853_v50 = vpack.c.bf16 %v1834_v20, %v1833_v17  ;;  %v1805_v33 = vadd.f32 %v4229_v57, %v1766_v34 }
 0x1de   : > { %v1839_v41 = vmax.f32 %v1807_v8, 0.0 }
 0x1df   : > { %v1808_v35 = vadd.f32 %v4229_v57, %v1769_v46  ;;  %v1767_v51 = vadd.f32 %v1726_v49, %v1374_v47  ;;  %3387 = vmatprep.mubr.bf16.mxu1 %v1853_v50  ;;  %v1837_v53 = vmax.f32 %v1805_v33, 0.0 }
 0x1e0   : > { %3388 = vmatmul.mubr.bf16.gmra.mxu1 %v1854_v22 }
 0x1e1   : > { %v1806_v38 = vadd.f32 %v4229_v57, %v1767_v51  ;;  %v1840_v54 = vmax.f32 %v1808_v35, 0.0 }
 0x1e3   : > { %v1838_v55 = vmax.f32 %v1806_v38, 0.0  ;;  %v1856_v19 = vpack.c.bf16 %v1840_v54, %v1839_v41 }
 0x1e5   : > { %v1855_v36 = vpack.c.bf16 %v1838_v55, %v1837_v53 }
 0x1e7   : > { %3391 = vmatprep.mubr.bf16.mxu1 %v1855_v36 }
 0x1e8   : > { %3392 = vmatmul.mubr.bf16.gmra.mxu1 %v1856_v19 }
 0x270   : > { %v3365_v57 = vpop.f32.mrf.mxu1 }
 0x271   : > { %v4293_v37 = vadd.f32 %v3365_v57, %v4290_v21 }
 0x272   : > { %v1962_v27 = vpop.f32.mrf.mxu1 }
 0x273   : > { %2091 = vst [vmem:[%s3664_s21 + $0x10] sm:$0xff] %v4293_v37  ;;  %v4298_v56 = vadd.f32 %v4290_v21, %v1962_v27 }
 0x274   : > { %v3366_v58 = vpop.f32.mrf.mxu1 }
 0x275   : > { %2089 = vst [vmem:[%s3664_s21] sm:$0xff] %v4298_v56  ;;  %v4303_v23 = vadd.f32 %v3366_v58, %v4290_v21 }
 0x276   : > { %v1965_v59 = vpop.f32.mrf.mxu1 }
 0x277   : > { %2092 = vst [vmem:[%s3664_s21 + $0x18] sm:$0xff] %v4303_v23  ;;  %v2138_v39 = vpack.c.bf16 %v4303_v23, %v4293_v37  ;;  %v4310_v60 = vadd.f32 %v4290_v21, %v1965_v59 }
 0x278   : > { %v3369_v61 = vpop.f32.mrf.mxu1 }
 0x279   : > { %2090 = vst [vmem:[%s3664_s21 + $0x8] sm:$0xff] %v4310_v60  ;;  %v2137_v24 = vpack.c.bf16 %v4310_v60, %v4298_v56  ;;  %v4317_v62 = vadd.f32 %v3369_v61, %v4290_v21 }
 0x27a   : > { %v1978_v40 = vpop.f32.mrf.mxu1 }
 0x27b   : > { %2095 = vst [vmem:[%s3664_s21 + $0x30] sm:$0xff] %v4317_v62  ;;  %v4322_v63 = vadd.f32 %v4290_v21, %v1978_v40 }
 0x27c   : > { %v3370_v0 = vpop.f32.mrf.mxu1 }
 0x27d   : > { %2093 = vst [vmem:[%s3664_s21 + $0x20] sm:$0xff] %v4322_v63  ;;  %v4327_v1 = vadd.f32 %v3370_v0, %v4290_v21 }
 0x27e   : > { %v1981_v2 = vpop.f32.mrf.mxu1 }
 0x27f   : > { %2096 = vst [vmem:[%s3664_s21 + $0x38] sm:$0xff] %v4327_v1  ;;  %v2140_v4 = vpack.c.bf16 %v4327_v1, %v4317_v62  ;;  %v4334_v5 = vadd.f32 %v4290_v21, %v1981_v2  ;;  %v2161_v62 = vpop.trf.xlu0  ;;  %v2178_v1 = vpop.trf.xlu1 }
 0x280   : > { %v3373_v6 = vpop.f32.mrf.mxu1 }
 0x281   : > { %2094 = vst [vmem:[%s3664_s21 + $0x28] sm:$0xff] %v4334_v5  ;;  %v2139_v7 = vpack.c.bf16 %v4334_v5, %v4322_v63  ;;  %v4341_v9 = vadd.f32 %v3373_v6, %v4290_v21 }
 0x282   : > { %v1994_v48 = vpop.f32.mrf.mxu1 }
 0x283   : > { %2099 = vst [vmem:[%s3664_s21 + $0x50] sm:$0xff] %v4341_v9  ;;  %v4346_v29 = vadd.f32 %v4290_v21, %v1994_v48  ;;  %v2179_v63 = vpop.trf.xlu1 }
 0x284   : > { %v3374_v26 = vpop.f32.mrf.mxu1 }
 0x285   : > { %2097 = vst [vmem:[%s3664_s21 + $0x40] sm:$0xff] %v4346_v29  ;;  %v4351_v31 = vadd.f32 %v3374_v26, %v4290_v21 }
 0x286   : > { %v1997_v28 = vpop.f32.mrf.mxu1 }
 0x287   : > { %2100 = vst [vmem:[%s3664_s21 + $0x58] sm:$0xff] %v4351_v31  ;;  %v4356_v52 = vadd.f32 %v4290_v21, %v1997_v28  ;;  %v2142_v26 = vpack.c.bf16 %v4351_v31, %v4341_v9 }
 0x288   : > { %v3377_v10 = vpop.f32.mrf.mxu1 }
 0x289   : > { %2098 = vst [vmem:[%s3664_s21 + $0x48] sm:$0xff] %v4356_v52  ;;  %v4361_v12 = vadd.f32 %v3377_v10, %v4290_v21 }
 0x28a   : > { %v2010_v11 = vpop.f32.mrf.mxu1 }
 0x28b   : > { %2103 = vst [vmem:[%s3664_s21 + $0x70] sm:$0xff] %v4361_v12  ;;  %v4366_v30 = vadd.f32 %v4290_v21, %v2010_v11 }
 0x28c   : > { %v3378_v13 = vpop.f32.mrf.mxu1 }
 0x28d   : > { %2101 = vst [vmem:[%s3664_s21 + $0x60] sm:$0xff] %v4366_v30  ;;  %v2022_v14 = vadd.f32 %v3378_v13, %v4290_v21  ;;  %v2121_v13 = vld [vmem:[#allocation2 + $0x30] sm:$0xff] }
 0x28e   : > { %v2013_v3 = vpop.f32.mrf.mxu1 }
 0x28f   : > { %2104 = vst [vmem:[%s3664_s21 + $0x78] sm:$0xff] %v2022_v14  ;;  %v2014_v32 = vadd.f32 %v4290_v21, %v2013_v3  ;;  %v2144_v0 = vpack.c.bf16 %v2022_v14, %v4361_v12 }
 0x290   : > { %v3381_v16 = vpop.f32.mrf.mxu1 }
 0x291   : > { %2102 = vst [vmem:[%s3664_s21 + $0x68] sm:$0xff] %v2014_v32  ;;  %v4375_v18 = vadd.f32 %v3381_v16, %v4290_v21  ;;  %v2143_v6 = vpack.c.bf16 %v2014_v32, %v4366_v30 }
 0x292   : > { %v2026_v15 = vpop.f32.mrf.mxu1 }
 0x293   : > { %2107 = vst [vmem:[%s3664_s21 + $0x90] sm:$0xff] %v4375_v18  ;;  %v4380_v20 = vadd.f32 %v4290_v21, %v2026_v15 }
 0x294   : > { %v3382_v34 = vpop.f32.mrf.mxu1 }
 0x295   : > { %2105 = vst [vmem:[%s3664_s21 + $0x80] sm:$0xff] %v4380_v20  ;;  %v4385_v42 = vadd.f32 %v3382_v34, %v4290_v21 }
 0x296   : > { %v2029_v17 = vpop.f32.mrf.mxu1 }
 0x297   : > { %2108 = vst [vmem:[%s3664_s21 + $0x98] sm:$0xff] %v4385_v42  ;;  %v4390_v43 = vadd.f32 %v4290_v21, %v2029_v17  ;;  %v2146_v11 = vpack.c.bf16 %v4385_v42, %v4375_v18  ;;  %v2122_v18 = vld [vmem:[#allocation2] sm:$0xff]  ;;  %v2123_v17 = vld [vmem:[#allocation2 + $0x58] sm:$0xff] }
 0x298   : > { %v3385_v44 = vpop.f32.mrf.mxu1 }
 0x299   : > { %2106 = vst [vmem:[%s3664_s21 + $0x88] sm:$0xff] %v4390_v43  ;;  %v2051_v45 = vadd.f32 %v3385_v44, %v4290_v21  ;;  %v2145_v9 = vpack.c.bf16 %v4390_v43, %v4380_v20 }
 0x29a   : > { %v2042_v46 = vpop.f32.mrf.mxu1 }
 0x29b   : > { %2111 = vst [vmem:[%s3664_s21 + $0xb0] sm:$0xff] %v2051_v45  ;;  %v2043_v47 = vadd.f32 %v4290_v21, %v2042_v46 }
 0x29c   : > { %v3386_v49 = vpop.f32.mrf.mxu1 }
 0x29d   : > { %2109 = vst [vmem:[%s3664_s21 + $0xa0] sm:$0xff] %v2043_v47  ;;  %v2054_v50 = vadd.f32 %v3386_v49, %v4290_v21 }
 0x29e   : > { %v2045_v33 = vpop.f32.mrf.mxu1 }
 0x29f   : > { %2112 = vst [vmem:[%s3664_s21 + $0xb8] sm:$0xff] %v2054_v50  ;;  %v2046_v35 = vadd.f32 %v4290_v21, %v2045_v33  ;;  %v2148_v10 = vpack.c.bf16 %v2054_v50, %v2051_v45 }
 0x2a0   : > { %v3389_v51 = vpop.f32.mrf.mxu1 }
 0x2a1   : > { %2110 = vst [vmem:[%s3664_s21 + $0xa8] sm:$0xff] %v2046_v35  ;;  %v2067_v22 = vadd.f32 %v3389_v51, %v4290_v21  ;;  %v2147_v12 = vpack.c.bf16 %v2046_v35, %v2043_v47  ;;  %v2124_v47 = vld [vmem:[#allocation2 + $0x18] sm:$0xff]  ;;  %v2125_v51 = vld [vmem:[#allocation2 + $0x50] sm:$0xff] }
 0x2a2   : > { %v2058_v8 = vpop.f32.mrf.mxu1 }
 0x2a3   : > { %2115 = vst [vmem:[%s3664_s21 + $0xd0] sm:$0xff] %v2067_v22  ;;  %v2059_v38 = vadd.f32 %v4290_v21, %v2058_v8 }
 0x2a4   : > { %v3390_v53 = vpop.f32.mrf.mxu1 }
 0x2a5   : > { %2113 = vst [vmem:[%s3664_s21 + $0xc0] sm:$0xff] %v2059_v38  ;;  %v2070_v54 = vadd.f32 %v3390_v53, %v4290_v21 }
 0x2a6   : > { %v2061_v55 = vpop.f32.mrf.mxu1 }
 0x2a7   : > { %2116 = vst [vmem:[%s3664_s21 + $0xd8] sm:$0xff] %v2070_v54  ;;  %v2062_v41 = vadd.f32 %v4290_v21, %v2061_v55  ;;  %v2150_v48 = vpack.c.bf16 %v2070_v54, %v2067_v22  ;;  %v2126_v54 = vld [vmem:[#allocation2 + $0x68] sm:$0xff] }
 0x2a8   : > { %v3393_v36 = vpop.f32.mrf.mxu1 }
 0x2a9   : > { %2114 = vst [vmem:[%s3664_s21 + $0xc8] sm:$0xff] %v2062_v41  ;;  %v2083_v19 = vadd.f32 %v3393_v36, %v4290_v21  ;;  %v2149_v28 = vpack.c.bf16 %v2062_v41, %v2059_v38 }
 0x2aa   : > { %v2074_v25 = vpop.f32.mrf.mxu1 }
 0x2ab   : > { %2119 = vst [vmem:[%s3664_s21 + $0xf0] sm:$0xff] %v2083_v19  ;;  %v2075_v57 = vadd.f32 %v4290_v21, %v2074_v25  ;;  %v2127_v25 = vld [vmem:[#allocation2 + $0x8] sm:$0xff] }
 0x2ac   : > { %v3394_v27 = vpop.f32.mrf.mxu1 }
 0x2ad   : > { %2117 = vst [vmem:[%s3664_s21 + $0xe0] sm:$0xff] %v2075_v57  ;;  %v2086_v58 = vadd.f32 %v3394_v27, %v4290_v21 }
 0x2ae   : > { %v2077_v59 = vpop.f32.mrf.mxu1 }
 0x2af   : > { %2120 = vst [vmem:[%s3664_s21 + $0xf8] sm:$0xff] %v2086_v58  ;;  %v2152_v61 = vpack.c.bf16 %v2086_v58, %v2083_v19  ;;  %v2078_v40 = vadd.f32 %v4290_v21, %v2077_v59  ;;  %v2141_v21 = vpack.c.bf16 %v4356_v52, %v4346_v29 }
 0x2b1   : > { %2118 = vst [vmem:[%s3664_s21 + $0xe8] sm:$0xff] %v2078_v40  ;;  %v2151_v2 = vpack.c.bf16 %v2078_v40, %v2075_v57  ;;  %3107 = vmatprep.subr.bf16.mxu0 %v2152_v61  ;;  %v2128_v61 = vld [vmem:[#allocation2 + $0x48] sm:$0xff] }
 0x2b2   : > { %3108 = vmatpush3.bf16.msra.mxu0 %v2144_v0 }
 0x2b3   : > { %3109 = vmatprep.subr.bf16.mxu0 %v2151_v2 }
 0x2b6   : > { %3110 = vmatpush3.bf16.msra.mxu0 %v2143_v6 }
 0x2b7   : > { %3111 = vmatprep.subr.bf16.mxu0 %v2150_v48  ;;  %v2129_v48 = vld [vmem:[#allocation2 + $0x40] sm:$0xff] }
 0x2ba   : > { %3112 = vmatpush3.bf16.msra.mxu0 %v2142_v26 }
 0x2bb   : > { %3113 = vmatprep.subr.bf16.mxu0 %v2149_v28 }
 0x2be   : > { %3114 = vmatpush3.bf16.msra.mxu0 %v2141_v21 }
 0x2bf   : > { %3115 = vmatprep.subr.bf16.mxu0 %v2148_v10 }
 0x2c2   : > { %3116 = vmatpush3.bf16.msra.mxu0 %v2140_v4  ;;  %v2162_v4 = vpop.trf.xlu0 }
 0x2c3   : > { %3117 = vmatprep.subr.bf16.mxu0 %v2147_v12  ;;  %v2130_v12 = vld [vmem:[#allocation2 + $0x20] sm:$0xff] }
 0x2c6   : > { %3118 = vmatpush3.bf16.msra.mxu0 %v2139_v7  ;;  %v2163_v5 = vpop.trf.xlu0  ;;  %v2180_v7 = vpop.trf.xlu1 }
 0x2c7   : > { %3119 = vmatprep.subr.bf16.mxu0 %v2146_v11 }
 0x2ca   : > { %3120 = vmatpush3.bf16.msra.mxu0 %v2138_v39  ;;  %v2164_v29 = vpop.trf.xlu0  ;;  %v2181_v37 = vpop.trf.xlu1 }
 0x2cb   : > { %3121 = vmatprep.subr.bf16.mxu0 %v2145_v9 }
 0x2ce   : > { %3122 = vmatpush3.bf16.msra.mxu0 %v2137_v24  ;;  %v2165_v23 = vpop.trf.xlu0  ;;  %v2182_v39 = vpop.trf.xlu1 }
 0x2d1   : > { %2218 = vmatmul.mubr.bf16.vlgmr.msra.gmra.mxu0 %v2161_v62 }
 0x2d2   : > { %2225 = vmatprep.mubr.bf16.mxu0 %v2178_v1  ;;  %v2166_v56 = vpop.trf.xlu0  ;;  %v2183_v60 = vpop.trf.xlu1 }
 0x2d6   : > { %v2167_v24 = vpop.trf.xlu0  ;;  %v2184_v31 = vpop.trf.xlu1 }
 0x2d9   : > { %2226 = vmatmul.mubr.bf16.gmra.mxu0 %v2162_v4  ;;  %v2131_v4 = vld [vmem:[#allocation2 + $0x10] sm:$0xff] }
 0x2da   : > { %2233 = vmatprep.mubr.bf16.mxu0 %v2179_v63  ;;  %v2168_v52 = vpop.trf.xlu0 }
 0x2e1   : > { %2234 = vmatmul.mubr.bf16.gmra.mxu0 %v2163_v5 }
 0x2e2   : > { %2241 = vmatprep.mubr.bf16.mxu0 %v2180_v7 }
 0x2e9   : > { %2242 = vmatmul.mubr.bf16.gmra.mxu0 %v2164_v29 }
 0x2ea   : > { %2249 = vmatprep.mubr.bf16.mxu0 %v2181_v37  ;;  %v2132_v37 = vld [vmem:[#allocation2 + $0x38] sm:$0xff] }
 0x2f1   : > { %2250 = vmatmul.mubr.bf16.gmra.mxu0 %v2165_v23 }
 0x2f2   : > { %2257 = vmatprep.mubr.bf16.mxu0 %v2182_v39 }
 0x2f9   : > { %2258 = vmatmul.mubr.bf16.gmra.mxu0 %v2166_v56 }
 0x2fa   : > { %2265 = vmatprep.mubr.bf16.mxu0 %v2183_v60 }
 0x301   : > { %2266 = vmatmul.mubr.bf16.gmra.mxu0 %v2167_v24  ;;  %v2133_v24 = vld [vmem:[#allocation2 + $0x60] sm:$0xff] }
 0x302   : > { %2273 = vmatprep.mubr.bf16.mxu0 %v2184_v31 }
 0x309   : > { %2274 = vmatmul.mubr.bf16.gmra.mxu0 %v2168_v52 }
 0x391   : > { %v3123_v30 = vpop.f32.mrf.mxu0 }
 0x393   : > { %v3124_v14 = vpop.f32.mrf.mxu0 }
 0x394   : > { %v3125_v3 = vadd.f32 %v3124_v14, %v3123_v30  ;;  %v2134_v14 = vld [vmem:[#allocation2 + $0x70] sm:$0xff] }
 0x395   : > { %v3126_v32 = vpop.f32.mrf.mxu0 }
 0x396   : > { %v2282_v16 = vadd.f32 %v3125_v3, %v2121_v13 }
 0x397   : > { %v3127_v15 = vpop.f32.mrf.mxu0 }
 0x398   : > { %2298 = vst [vmem:[#allocation2 + $0x30] sm:$0xff] %v2282_v16  ;;  %v3128_v20 = vadd.f32 %v3127_v15, %v3126_v32  ;;  %v2135_v15 = vld [vmem:[#allocation2 + $0x78] sm:$0xff] }
 0x399   : > { %v3129_v34 = vpop.f32.mrf.mxu0 }
 0x39a   : > { %v2283_v42 = vadd.f32 %v3128_v20, %v2122_v18 }
 0x39b   : > { %v3130_v43 = vpop.f32.mrf.mxu0 }
 0x39c   : > { %2299 = vst [vmem:[#allocation2] sm:$0xff] %v2283_v42  ;;  %v3131_v44 = vadd.f32 %v3130_v43, %v3129_v34  ;;  %v2136_v43 = vld [vmem:[#allocation2 + $0x28] sm:$0xff] }
 0x39d   : > { %v3132_v45 = vpop.f32.mrf.mxu0 }
 0x39e   : > { %v2284_v46 = vadd.f32 %v3131_v44, %v2123_v17 }
 0x39f   : > { %v3133_v49 = vpop.f32.mrf.mxu0 }
 0x3a0   : > { %2300 = vst [vmem:[#allocation2 + $0x58] sm:$0xff] %v2284_v46  ;;  %v3134_v50 = vadd.f32 %v3133_v49, %v3132_v45 }
 0x3a1   : > { %v3135_v33 = vpop.f32.mrf.mxu0 }
 0x3a2   : > { %v2285_v35 = vadd.f32 %v3134_v50, %v2124_v47 }
 0x3a3   : > { %v3136_v22 = vpop.f32.mrf.mxu0 }
 0x3a4   : > { %2301 = vst [vmem:[#allocation2 + $0x18] sm:$0xff] %v2285_v35  ;;  %v3137_v8 = vadd.f32 %v3136_v22, %v3135_v33 }
 0x3a5   : > { %v3138_v38 = vpop.f32.mrf.mxu0 }
 0x3a6   : > { %v2286_v53 = vadd.f32 %v3137_v8, %v2125_v51 }
 0x3a7   : > { %v3139_v55 = vpop.f32.mrf.mxu0 }
 0x3a8   : > { %2302 = vst [vmem:[#allocation2 + $0x50] sm:$0xff] %v2286_v53  ;;  %v3140_v41 = vadd.f32 %v3139_v55, %v3138_v38 }
 0x3a9   : > { %v3141_v36 = vpop.f32.mrf.mxu0 }
 0x3aa   : > { %v2287_v19 = vadd.f32 %v3140_v41, %v2126_v54 }
 0x3ab   : > { %v3142_v57 = vpop.f32.mrf.mxu0 }
 0x3ac   : > { %2303 = vst [vmem:[#allocation2 + $0x68] sm:$0xff] %v2287_v19  ;;  %v3143_v27 = vadd.f32 %v3142_v57, %v3141_v36 }
 0x3ad   : > { %v3144_v58 = vpop.f32.mrf.mxu0 }
 0x3ae   : > { %v2288_v59 = vadd.f32 %v3143_v27, %v2127_v25 }
 0x3af   : > { %v3145_v40 = vpop.f32.mrf.mxu0 }
 0x3b0   : > { %2304 = vst [vmem:[#allocation2 + $0x8] sm:$0xff] %v2288_v59  ;;  %v3146_v0 = vadd.f32 %v3145_v40, %v3144_v58 }
 0x3b1   : > { %v3147_v2 = vpop.f32.mrf.mxu0 }
 0x3b2   : > { %v2289_v6 = vadd.f32 %v3146_v0, %v2128_v61 }
 0x3b3   : > { %v3148_v26 = vpop.f32.mrf.mxu0 }
 0x3b4   : > { %2305 = vst [vmem:[#allocation2 + $0x48] sm:$0xff] %v2289_v6  ;;  %v3149_v28 = vadd.f32 %v3148_v26, %v3147_v2 }
 0x3b5   : > { %v3150_v21 = vpop.f32.mrf.mxu0 }
 0x3b6   : > { %v2290_v10 = vadd.f32 %v3149_v28, %v2129_v48 }
 0x3b7   : > { %v3151_v11 = vpop.f32.mrf.mxu0 }
 0x3b8   : > { %2306 = vst [vmem:[#allocation2 + $0x40] sm:$0xff] %v2290_v10  ;;  %v3152_v9 = vadd.f32 %v3151_v11, %v3150_v21 }
 0x3b9   : > { %v3153_v62 = vpop.f32.mrf.mxu0 }
 0x3ba   : > { %v2291_v1 = vadd.f32 %v3152_v9, %v2130_v12 }
 0x3bb   : > { %v3154_v63 = vpop.f32.mrf.mxu0 }
 0x3bc   : > { %2307 = vst [vmem:[#allocation2 + $0x20] sm:$0xff] %v2291_v1  ;;  %v3155_v5 = vadd.f32 %v3154_v63, %v3153_v62 }
 0x3bd   : > { %v3156_v7 = vpop.f32.mrf.mxu0 }
 0x3be   : > { %v2292_v29 = vadd.f32 %v3155_v5, %v2131_v4 }
 0x3bf   : > { %v3157_v23 = vpop.f32.mrf.mxu0 }
 0x3c0   : > { %2308 = vst [vmem:[#allocation2 + $0x10] sm:$0xff] %v2292_v29  ;;  %v3158_v39 = vadd.f32 %v3157_v23, %v3156_v7 }
 0x3c1   : > { %v3159_v56 = vpop.f32.mrf.mxu0 }
 0x3c2   : > { %v2293_v60 = vadd.f32 %v3158_v39, %v2132_v37 }
 0x3c3   : > { %v3160_v31 = vpop.f32.mrf.mxu0 }
 0x3c4   : > { %2309 = vst [vmem:[#allocation2 + $0x38] sm:$0xff] %v2293_v60  ;;  %v3161_v52 = vadd.f32 %v3160_v31, %v3159_v56 }
 0x3c5   : > { %v3162_v30 = vpop.f32.mrf.mxu0 }
 0x3c6   : > { %v2294_v13 = vadd.f32 %v3161_v52, %v2133_v24 }
 0x3c7   : > { %v3163_v3 = vpop.f32.mrf.mxu0 }
 0x3c8   : > { %2310 = vst [vmem:[#allocation2 + $0x60] sm:$0xff] %v2294_v13  ;;  %v3164_v32 = vadd.f32 %v3163_v3, %v3162_v30 }
 0x3c9   : > { %v3165_v16 = vpop.f32.mrf.mxu0 }
 0x3ca   : > { %v2295_v18 = vadd.f32 %v3164_v32, %v2134_v14 }
 0x3cb   : > { %v3166_v20 = vpop.f32.mrf.mxu0 }
 0x3cc   : > { %2311 = vst [vmem:[#allocation2 + $0x70] sm:$0xff] %v2295_v18  ;;  %v3167_v34 = vadd.f32 %v3166_v20, %v3165_v16 }
 0x3cd   : > { %v3168_v42 = vpop.f32.mrf.mxu0 }
 0x3ce   : > { %v2296_v17 = vadd.f32 %v3167_v34, %v2135_v15 }
 0x3cf   : > { %v3169_v44 = vpop.f32.mrf.mxu0 }
 0x3d0   : > { %2312 = vst [vmem:[#allocation2 + $0x78] sm:$0xff] %v2296_v17  ;;  %v3170_v45 = vadd.f32 %v3169_v44, %v3168_v42  ;;  %2317 = sbr.rel (%p2991_p5) target bundleno = 1446 (0x5a6), region = 76 }
 0x3d2   : > { %v2297_v46 = vadd.f32 %v3170_v45, %v2136_v43 }
 0x3d4   : > { %2313 = vst [vmem:[#allocation2 + $0x28] sm:$0xff] %v2297_v46 }
 0x3d5   : > { %v3541_v47 = vld [vmem:[%s4600_s9 + $0x38] sm:$0xff]   ;;  %v3542_v49 = vld [vmem:[%s4600_s9 + $0x30] sm:$0xff]   ;;  %v3543_v50 = vld [vmem:[%s4600_s9 + $0x28] sm:$0xff]  }
 0x3d6   : > { %3395 = vmatprep.subr.bf16.mxu0 %v3541_v47  ;;  %v3544_v33 = vld [vmem:[%s4600_s9 + $0x20] sm:$0xff]   ;;  %v2318_v35 = vld [vmem:[#allocation2 + $0x30] sm:$0xff]  ;;  %v3545_v8 = vld [vmem:[%s4600_s9 + $0x18] sm:$0xff]  }
 0x3d7   : > { %3396 = vmatpush3.bf16.msra.mxu0 %v3541_v47  ;;  %v2319_v51 = vld [vmem:[#allocation2] sm:$0xff]  ;;  %v3549_v38 = vld [vmem:[%s4601_s10 + $0x38] sm:$0xff]   ;;  %v3550_v53 = vld [vmem:[%s4601_s10 + $0x30] sm:$0xff]  }
 0x3d8   : > { %3397 = vmatprep.subr.bf16.mxu0 %v3542_v49  ;;  %v2334_v22 = vpack.c.bf16 %v2319_v51, %v2318_v35  ;;  %v3546_v54 = vld [vmem:[%s4600_s9 + $0x10] sm:$0xff]   ;;  %3427 = vmatprep.subr.bf16.mxu1 %v3549_v38  ;;  %v3551_v55 = vld [vmem:[%s4601_s10 + $0x28] sm:$0xff]   ;;  %v3552_v36 = vld [vmem:[%s4601_s10 + $0x20] sm:$0xff]  }
 0x3d9   : > { %3428 = vmatpush3.bf16.msra.mxu1 %v3549_v38  ;;  %v3547_v41 = vld [vmem:[%s4600_s9 + $0x8] sm:$0xff]   ;;  %v3548_v19 = vld [vmem:[%s4600_s9] sm:$0xff]   ;;  %v3553_v25 = vld [vmem:[%s4601_s10 + $0x18] sm:$0xff]  }
 0x3da   : > { %3411 = vmatprep.mubr.bf16.mxu0 %v2334_v22  ;;  %3429 = vmatprep.subr.bf16.mxu1 %v3550_v53  ;;  %v2320_v57 = vld [vmem:[#allocation2 + $0x58] sm:$0xff]  ;;  %v2322_v58 = vld [vmem:[#allocation2 + $0x50] sm:$0xff]  ;;  %v2323_v59 = vld [vmem:[#allocation2 + $0x68] sm:$0xff] }
 0x3db   : > { %3398 = vmatpush3.bf16.msra.mxu0 %v3542_v49  ;;  %v2321_v27 = vld [vmem:[#allocation2 + $0x18] sm:$0xff]  ;;  %v2336_v40 = vpack.c.bf16 %v2323_v59, %v2322_v58  ;;  %v2324_v0 = vld [vmem:[#allocation2 + $0x8] sm:$0xff]  ;;  %v2326_v6 = vld [vmem:[#allocation2 + $0x40] sm:$0xff] }
 0x3dc   : > { %3399 = vmatprep.subr.bf16.mxu0 %v3543_v50  ;;  %v2335_v61 = vpack.c.bf16 %v2321_v27, %v2320_v57  ;;  %v2325_v2 = vld [vmem:[#allocation2 + $0x48] sm:$0xff]  ;;  %v2327_v48 = vld [vmem:[#allocation2 + $0x20] sm:$0xff]  ;;  %v2328_v21 = vld [vmem:[#allocation2 + $0x10] sm:$0xff] }
 0x3dd   : > { %3430 = vmatpush3.bf16.msra.mxu1 %v3550_v53  ;;  %v2337_v26 = vpack.c.bf16 %v2325_v2, %v2324_v0  ;;  %v2338_v28 = vpack.c.bf16 %v2327_v48, %v2326_v6  ;;  %v2329_v10 = vld [vmem:[#allocation2 + $0x38] sm:$0xff]  ;;  %v2330_v12 = vld [vmem:[#allocation2 + $0x60] sm:$0xff]  ;;  %v2331_v11 = vld [vmem:[#allocation2 + $0x70] sm:$0xff] }
 0x3de   : > { %3431 = vmatprep.subr.bf16.mxu1 %v3551_v55  ;;  %v2339_v9 = vpack.c.bf16 %v2329_v10, %v2328_v21  ;;  %v2340_v62 = vpack.c.bf16 %v2331_v11, %v2330_v12  ;;  %v2332_v1 = vld [vmem:[#allocation2 + $0x78] sm:$0xff]  ;;  %v2333_v4 = vld [vmem:[#allocation2 + $0x28] sm:$0xff]  ;;  %v3554_v5 = vld [vmem:[%s4601_s10 + $0x10] sm:$0xff]  }
 0x3df   : > { %3400 = vmatpush3.bf16.msra.mxu0 %v3543_v50  ;;  %v2341_v63 = vpack.c.bf16 %v2333_v4, %v2332_v1  ;;  %v3555_v7 = vld [vmem:[%s4601_s10 + $0x8] sm:$0xff]   ;;  %v3556_v29 = vld [vmem:[%s4601_s10] sm:$0xff]   ;;  %v2361_v56 = vld [vmem:[%s4599_s8 + $0x18] sm:$0xff] }
 0x3e0   : > { %3401 = vmatprep.subr.bf16.mxu0 %v3544_v33  ;;  %v2358_v39 = vld [vmem:[%s4599_s8] sm:$0xff]  ;;  %v2360_v60 = vld [vmem:[%s4599_s8 + $0x10] sm:$0xff]  ;;  %v2359_v31 = vld [vmem:[%s4599_s8 + $0x8] sm:$0xff] }
 0x3e1   : > { %3432 = vmatpush3.bf16.msra.mxu1 %v3551_v55  ;;  %v2362_v42 = vld [vmem:[%s4599_s8 + $0x20] sm:$0xff]  ;;  %v2365_v17 = vld [vmem:[%s4599_s8 + $0x38] sm:$0xff]  ;;  %v2364_v43 = vld [vmem:[%s4599_s8 + $0x30] sm:$0xff] }
 0x3e2   : > { %3433 = vmatprep.subr.bf16.mxu1 %v3552_v36  ;;  %v2363_v47 = vld [vmem:[%s4599_s8 + $0x28] sm:$0xff]  ;;  %v2370_v12 = vld [vmem:[%s4599_s8 + $0x60] sm:$0xff]  ;;  %v2373_v11 = vld [vmem:[%s4599_s8 + $0x78] sm:$0xff] }
 0x3e3   : > { %3402 = vmatpush3.bf16.msra.mxu0 %v3544_v33  ;;  %v2367_v58 = vld [vmem:[%s4599_s8 + $0x48] sm:$0xff] }
 0x3e4   : > { %3403 = vmatprep.subr.bf16.mxu0 %v3545_v8 }
 0x3e5   : > { %3434 = vmatpush3.bf16.msra.mxu1 %v3552_v36  ;;  %v2369_v36 = vld [vmem:[%s4599_s8 + $0x58] sm:$0xff] }
 0x3e6   : > { %3435 = vmatprep.subr.bf16.mxu1 %v3553_v25 }
 0x3e7   : > { %3404 = vmatpush3.bf16.msra.mxu0 %v3545_v8 }
 0x3e8   : > { %3405 = vmatprep.subr.bf16.mxu0 %v3546_v54 }
 0x3e9   : > { %3436 = vmatpush3.bf16.msra.mxu1 %v3553_v25  ;;  %v2368_v25 = vld [vmem:[%s4599_s8 + $0x50] sm:$0xff] }
 0x3ea   : > { %3437 = vmatprep.subr.bf16.mxu1 %v3554_v5 }
 0x3eb   : > { %3406 = vmatpush3.bf16.msra.mxu0 %v3546_v54 }
 0x3ec   : > { %3407 = vmatprep.subr.bf16.mxu0 %v3547_v41 }
 0x3ed   : > { %3438 = vmatpush3.bf16.msra.mxu1 %v3554_v5 }
 0x3ee   : > { %3439 = vmatprep.subr.bf16.mxu1 %v3555_v7 }
 0x3ef   : > { %3408 = vmatpush3.bf16.msra.mxu0 %v3547_v41  ;;  %v2366_v41 = vld [vmem:[%s4599_s8 + $0x40] sm:$0xff] }
 0x3f0   : > { %3409 = vmatprep.subr.bf16.mxu0 %v3548_v19 }
 0x3f1   : > { %3440 = vmatpush3.bf16.msra.mxu1 %v3555_v7 }
 0x3f2   : > { %3441 = vmatprep.subr.bf16.mxu1 %v3556_v29 }
 0x3f3   : > { %3410 = vmatpush3.bf16.msra.mxu0 %v3548_v19 }
 0x3f5   : > { %3442 = vmatpush3.bf16.msra.mxu1 %v3556_v29 }
 0x3f6   : > { %3412 = vmatmul.mubr.bf16.vlgmr.msra.gmra.mxu0 %v2335_v61 }
 0x3f7   : > { %3415 = vmatprep.mubr.bf16.mxu0 %v2336_v40 }
 0x3fe   : > { %3416 = vmatmul.mubr.bf16.gmra.mxu0 %v2337_v26 }
 0x3ff   : > { %3419 = vmatprep.mubr.bf16.mxu0 %v2338_v28 }
 0x406   : > { %3420 = vmatmul.mubr.bf16.gmra.mxu0 %v2339_v9 }
 0x407   : > { %3423 = vmatprep.mubr.bf16.mxu0 %v2340_v62  ;;  %v2372_v62 = vld [vmem:[%s4599_s8 + $0x70] sm:$0xff] }
 0x40e   : > { %3424 = vmatmul.mubr.bf16.gmra.mxu0 %v2341_v63  ;;  %v2371_v63 = vld [vmem:[%s4599_s8 + $0x68] sm:$0xff] }
 0x4b6   : > { %v3413_v37 = vpop.f32.mrf.mxu0 }
 0x4b7   : > { %v2465_v13 = vadd.f32 %v3413_v37, %v2360_v60 }
 0x4b8   : > { %v2456_v23 = vpop.f32.mrf.mxu0 }
 0x4b9   : > { %v2457_v52 = vadd.f32 %v2456_v23, %v2358_v39  ;;  %v2521_v20 = vmax.f32 %v2465_v13, 0.0 }
 0x4ba   : > { %v3414_v24 = vpop.f32.mrf.mxu0 }
 0x4bb   : > { %v2468_v30 = vadd.f32 %v3414_v24, %v2361_v56  ;;  %v2519_v18 = vmax.f32 %v2457_v52, 0.0 }
 0x4bc   : > { %v2459_v14 = vpop.f32.mrf.mxu0 }
 0x4bd   : > { %v2460_v3 = vadd.f32 %v2459_v14, %v2359_v31  ;;  %v2522_v32 = vmax.f32 %v2468_v30, 0.0  ;;  %v3000_v30 = vld [vmem:[%s4602_s11] ss:$0 sm:$0xff] }
 0x4be   : > { %v3417_v16 = vpop.f32.mrf.mxu0 }
 0x4bf   : > { %v2520_v15 = vmax.f32 %v2460_v3, 0.0  ;;  %v2536_v45 = vpack.c.bf16 %v2522_v32, %v2521_v20  ;;  %v2481_v33 = vadd.f32 %v3417_v16, %v2364_v43 }
 0x4c0   : > { %v2472_v34 = vpop.f32.mrf.mxu0 }
 0x4c1   : > { %v2535_v44 = vpack.c.bf16 %v2520_v15, %v2519_v18  ;;  %v2473_v49 = vadd.f32 %v2472_v34, %v2362_v42  ;;  %v2525_v54 = vmax.f32 %v2481_v33, 0.0 }
 0x4c2   : > { %v3418_v46 = vpop.f32.mrf.mxu0 }
 0x4c3   : > { %v2484_v50 = vadd.f32 %v3418_v46, %v2365_v17  ;;  %3443 = vmatprep.mubr.bf16.mxu1 %v2535_v44  ;;  %v2523_v38 = vmax.f32 %v2473_v49, 0.0 }
 0x4c4   : > { %v2475_v35 = vpop.f32.mrf.mxu0  ;;  %3444 = vmatmul.mubr.bf16.vlgmr.msra.gmra.mxu1 %v2536_v45 }
 0x4c5   : > { %v2476_v51 = vadd.f32 %v2475_v35, %v2363_v47  ;;  %v2526_v22 = vmax.f32 %v2484_v50, 0.0 }
 0x4c6   : > { %v3421_v8 = vpop.f32.mrf.mxu0 }
 0x4c7   : > { %v2524_v53 = vmax.f32 %v2476_v51, 0.0  ;;  %v2538_v57 = vpack.c.bf16 %v2526_v22, %v2525_v54  ;;  %v2497_v40 = vadd.f32 %v3421_v8, %v2368_v25 }
 0x4c8   : > { %v2488_v55 = vpop.f32.mrf.mxu0 }
 0x4c9   : > { %v2537_v19 = vpack.c.bf16 %v2524_v53, %v2523_v38  ;;  %v2489_v59 = vadd.f32 %v2488_v55, %v2366_v41  ;;  %v2529_v21 = vmax.f32 %v2497_v40, 0.0 }
 0x4ca   : > { %v3422_v27 = vpop.f32.mrf.mxu0 }
 0x4cb   : > { %v2500_v61 = vadd.f32 %v3422_v27, %v2369_v36  ;;  %3447 = vmatprep.mubr.bf16.mxu1 %v2537_v19  ;;  %v2527_v26 = vmax.f32 %v2489_v59, 0.0 }
 0x4cc   : > { %v2491_v0 = vpop.f32.mrf.mxu0  ;;  %3448 = vmatmul.mubr.bf16.gmra.mxu1 %v2538_v57 }
 0x4cd   : > { %v2492_v2 = vadd.f32 %v2491_v0, %v2367_v58  ;;  %v2530_v6 = vmax.f32 %v2500_v61, 0.0 }
 0x4ce   : > { %v3425_v48 = vpop.f32.mrf.mxu0 }
 0x4cf   : > { %v2528_v28 = vmax.f32 %v2492_v2, 0.0  ;;  %v2540_v1 = vpack.c.bf16 %v2530_v6, %v2529_v21  ;;  %v2513_v29 = vadd.f32 %v3425_v48, %v2372_v62 }
 0x4d0   : > { %v2504_v10 = vpop.f32.mrf.mxu0 }
 0x4d1   : > { %v2539_v9 = vpack.c.bf16 %v2528_v28, %v2527_v26  ;;  %v2505_v5 = vadd.f32 %v2504_v10, %v2370_v12  ;;  %v2533_v24 = vmax.f32 %v2513_v29, 0.0 }
 0x4d2   : > { %v3426_v4 = vpop.f32.mrf.mxu0 }
 0x4d3   : > { %v2516_v7 = vadd.f32 %v3426_v4, %v2373_v11  ;;  %3451 = vmatprep.mubr.bf16.mxu1 %v2539_v9  ;;  %v2531_v56 = vmax.f32 %v2505_v5, 0.0 }
 0x4d4   : > { %v2507_v37 = vpop.f32.mrf.mxu0  ;;  %3452 = vmatmul.mubr.bf16.gmra.mxu1 %v2540_v1 }
 0x4d5   : > { %v2508_v23 = vadd.f32 %v2507_v37, %v2371_v63  ;;  %v2534_v39 = vmax.f32 %v2516_v7, 0.0 }
 0x4d7   : > { %v2532_v60 = vmax.f32 %v2508_v23, 0.0  ;;  %v2542_v52 = vpack.c.bf16 %v2534_v39, %v2533_v24 }
 0x4d9   : > { %v2541_v31 = vpack.c.bf16 %v2532_v60, %v2531_v56 }
 0x4db   : > { %3455 = vmatprep.mubr.bf16.mxu1 %v2541_v31 }
 0x4dc   : > { %3456 = vmatmul.mubr.bf16.gmra.mxu1 %v2542_v52 }
 0x584   : > { %v3445_v13 = vpop.f32.mrf.mxu1 }
 0x585   : > { %v2657_v14 = vadd.f32 %v3445_v13, %v3000_v30 }
 0x586   : > { %v2648_v3 = vpop.f32.mrf.mxu1 }
 0x587   : > { %2713 = vst [vmem:[%s4604_s13 + $0x10] sm:$0xff] %v2657_v14  ;;  %v2649_v32 = vadd.f32 %v3000_v30, %v2648_v3 }
 0x588   : > { %v3446_v16 = vpop.f32.mrf.mxu1 }
 0x589   : > { %2711 = vst [vmem:[%s4604_s13] sm:$0xff] %v2649_v32  ;;  %v2660_v18 = vadd.f32 %v3446_v16, %v3000_v30 }
 0x58a   : > { %v2651_v15 = vpop.f32.mrf.mxu1 }
 0x58b   : > { %2714 = vst [vmem:[%s4604_s13 + $0x18] sm:$0xff] %v2660_v18  ;;  %v2652_v20 = vadd.f32 %v3000_v30, %v2651_v15 }
 0x58c   : > { %v3449_v34 = vpop.f32.mrf.mxu1 }
 0x58d   : > { %2712 = vst [vmem:[%s4604_s13 + $0x8] sm:$0xff] %v2652_v20  ;;  %v2673_v42 = vadd.f32 %v3449_v34, %v3000_v30 }
 0x58e   : > { %v2664_v17 = vpop.f32.mrf.mxu1 }
 0x58f   : > { %2717 = vst [vmem:[%s4604_s13 + $0x30] sm:$0xff] %v2673_v42  ;;  %v2665_v43 = vadd.f32 %v3000_v30, %v2664_v17 }
 0x590   : > { %v3450_v44 = vpop.f32.mrf.mxu1 }
 0x591   : > { %2715 = vst [vmem:[%s4604_s13 + $0x20] sm:$0xff] %v2665_v43  ;;  %v2676_v45 = vadd.f32 %v3450_v44, %v3000_v30 }
 0x592   : > { %v2667_v46 = vpop.f32.mrf.mxu1 }
 0x593   : > { %2718 = vst [vmem:[%s4604_s13 + $0x38] sm:$0xff] %v2676_v45  ;;  %v2668_v47 = vadd.f32 %v3000_v30, %v2667_v46 }
 0x594   : > { %v3453_v49 = vpop.f32.mrf.mxu1 }
 0x595   : > { %2716 = vst [vmem:[%s4604_s13 + $0x28] sm:$0xff] %v2668_v47  ;;  %v2689_v50 = vadd.f32 %v3453_v49, %v3000_v30 }
 0x596   : > { %v2680_v33 = vpop.f32.mrf.mxu1 }
 0x597   : > { %2721 = vst [vmem:[%s4604_s13 + $0x50] sm:$0xff] %v2689_v50  ;;  %v2681_v35 = vadd.f32 %v3000_v30, %v2680_v33 }
 0x598   : > { %v3454_v51 = vpop.f32.mrf.mxu1 }
 0x599   : > { %2719 = vst [vmem:[%s4604_s13 + $0x40] sm:$0xff] %v2681_v35  ;;  %v2692_v22 = vadd.f32 %v3454_v51, %v3000_v30 }
 0x59a   : > { %v2683_v8 = vpop.f32.mrf.mxu1 }
 0x59b   : > { %2722 = vst [vmem:[%s4604_s13 + $0x58] sm:$0xff] %v2692_v22  ;;  %v2684_v38 = vadd.f32 %v3000_v30, %v2683_v8 }
 0x59c   : > { %v3457_v53 = vpop.f32.mrf.mxu1 }
 0x59d   : > { %2720 = vst [vmem:[%s4604_s13 + $0x48] sm:$0xff] %v2684_v38  ;;  %v2705_v54 = vadd.f32 %v3457_v53, %v3000_v30 }
 0x59e   : > { %v2696_v55 = vpop.f32.mrf.mxu1 }
 0x59f   : > { %2725 = vst [vmem:[%s4604_s13 + $0x70] sm:$0xff] %v2705_v54  ;;  %v2697_v41 = vadd.f32 %v3000_v30, %v2696_v55 }
 0x5a0   : > { %v3458_v36 = vpop.f32.mrf.mxu1 }
 0x5a1   : > { %2723 = vst [vmem:[%s4604_s13 + $0x60] sm:$0xff] %v2697_v41  ;;  %v2708_v19 = vadd.f32 %v3458_v36, %v3000_v30 }
 0x5a2   : > { %v2699_v25 = vpop.f32.mrf.mxu1 }
 0x5a3   : > { %2726 = vst [vmem:[%s4604_s13 + $0x78] sm:$0xff] %v2708_v19  ;;  %v2700_v57 = vadd.f32 %v3000_v30, %v2699_v25 }
 0x5a5   : > { %2724 = vst [vmem:[%s4604_s13 + $0x68] sm:$0xff] %v2700_v57 }
 0x5a6 PF: > { %s24_s25 = sadd.s32 1, %s3563_s25  }
 0x5a7   : > { %p21_p6 = scmp.ge.s32.totalorder %s24_s25, 5  }
 0x5a9   :  { %23 = sbr.rel (!%p21_p6) target bundleno = 1 (0x1), region = 117 }

</bundles_post_ra>
